<compile_context>
chip_gen: v7x
topology: tpu7x:2x2x1
jax: 0.10.0
libtpu: 0.0.40
codegen_flags: <defaults>
</compile_context>

<pallas_src>
import jax
import jax.numpy as jnp
from jax import lax
from jax.experimental import pallas as pl
from jax.experimental.pallas import tpu as pltpu

NEG_BIG = -1e30  # used instead of -inf for masked (non-existent) edges


def gat_kernel(a_src_ref, a_dst_ref, h_dst_ref, h_src_ref, adj_ref, o_ref,
               m_sc, l_sc, acc_sc):
    j = pl.program_id(1)

    @pl.when(j == 0)
    def _():
        m_sc[...] = jnp.full_like(m_sc, NEG_BIG)
        l_sc[...] = jnp.zeros_like(l_sc)
        acc_sc[...] = jnp.zeros_like(acc_sc)

    h_dst = h_dst_ref[...]                          # [Td, Dp] f32
    h_src = h_src_ref[...]                          # [Ts, Dp] f32

    # dst contribution: column [Td, 1]  (a_dst . h_i)
    d = jnp.dot(h_dst, a_dst_ref[...], preferred_element_type=jnp.float32)
    # src contribution: row [1, Ts], produced lane-major directly by contracting the
    # feature axes — avoids a sublane->lane reshape/transpose of a [Ts, 1] result.
    s = lax.dot_general(a_src_ref[...], h_src,
                        dimension_numbers=(((1,), (1,)), ((), ())),
                        preferred_element_type=jnp.float32)

    # e[i, j] = a_src . h_j + a_dst . h_i   (edge j -> i), leaky_relu slope 0.01
    e = s + d                                       # [Td, Ts]
    e = jnp.where(e > 0, e, 0.01 * e)

    mask = adj_ref[...].astype(jnp.int32) > 0       # int8 adjacency -> edge mask
    e_masked = jnp.where(mask, e, NEG_BIG)

    # Online (flash-style) masked softmax over incoming edges.
    m_prev = m_sc[...]
    m_new = jnp.maximum(m_prev, jnp.max(e_masked, axis=-1, keepdims=True))
    corr = jnp.exp(m_prev - m_new)                  # <= 1, no overflow possible
    p = jnp.where(mask, jnp.exp(e_masked - m_new), 0.0)

    l_sc[...] = corr * l_sc[...] + jnp.sum(p, axis=-1, keepdims=True)
    # Aggregation on the MXU with bf16 inputs, f32 accumulation.
    acc_sc[...] = corr * acc_sc[...] + jnp.dot(
        p.astype(jnp.bfloat16), h_src.astype(jnp.bfloat16),
        preferred_element_type=jnp.float32)
    m_sc[...] = m_new

    @pl.when(j == pl.num_programs(1) - 1)
    def _():
        # Guard rows with no incoming edges (denom == 0) -> output 0, matching the
        # masked-softmax reference, instead of 0 * inf = NaN.
        inv = pl.reciprocal(jnp.maximum(l_sc[...], 1e-30), approx=True)
        acc = acc_sc[...] * inv
        # ELU, with exp only evaluated on the non-positive branch's clamped argument.
        out = jnp.where(acc > 0, acc, jnp.exp(jnp.minimum(acc, 0.0)) - 1.0)
        o_ref[...] = out.astype(o_ref.dtype)


def gat_layer(h, w_attn, adj, *, tile=128):
    """h: [N, D] f32; w_attn: [1, 2D] f32; adj: [N, N] int8 (adj[i,j]=1 iff j->i)."""
    N, D = h.shape
    assert w_attn.shape == (1, 2 * D)
    assert adj.shape == (N, N)

    # Lane-dense feature dim and tile-aligned node dim (zero padding is semantically
    # inert: padded features contribute 0 to scores/aggregation, padded nodes have no
    # edges and are sliced away).
    Dp = ((D + 127) // 128) * 128
    Np = ((N + tile - 1) // tile) * tile

    h_p = jnp.zeros((Np, Dp), h.dtype).at[:N, :D].set(h)
    adj_p = jnp.zeros((Np, Np), jnp.int8).at[:N, :N].set(adj.astype(jnp.int8))
    a_src_row = jnp.zeros((1, Dp), jnp.float32).at[0, :D].set(w_attn[0, :D])
    a_dst_col = jnp.zeros((Dp, 1), jnp.float32).at[:D, 0].set(w_attn[0, D:])

    n_tiles = Np // tile

    out_p = pl.pallas_call(
        gat_kernel,
        out_shape=jax.ShapeDtypeStruct((Np, Dp), h.dtype),
        grid_spec=pltpu.PrefetchScalarGridSpec(
            num_scalar_prefetch=0,
            grid=(n_tiles, n_tiles),                 # (dst tiles, src tiles=reduction)
            in_specs=[
                pl.BlockSpec((1, Dp), lambda i, j: (0, 0)),       # a_src row
                pl.BlockSpec((Dp, 1), lambda i, j: (0, 0)),       # a_dst column
                pl.BlockSpec((tile, Dp), lambda i, j: (i, 0)),    # h for dst nodes
                pl.BlockSpec((tile, Dp), lambda i, j: (j, 0)),    # h for src nodes
                pl.BlockSpec((tile, tile), lambda i, j: (i, j)),  # adjacency (int8)
            ],
            out_specs=pl.BlockSpec((tile, Dp), lambda i, j: (i, 0)),
            scratch_shapes=[
                pltpu.VMEM((tile, 1), jnp.float32),   # running max
                pltpu.VMEM((tile, 1), jnp.float32),   # running denominator
                pltpu.VMEM((tile, Dp), jnp.float32),  # running accumulator
            ],
        ),
        compiler_params=pltpu.CompilerParams(
            dimension_semantics=("parallel", "arbitrary"),
            vmem_limit_bytes=32 * 1024 * 1024,
        ),
    )(a_src_row, a_dst_col, h_p, h_p, adj_p)

    return out_p[:N, :D]


def gat_layer_ref(h, w_attn, adj):
    """Pure-JAX f32 reference for correctness checking."""
    N, D = h.shape
    a_src = w_attn[0, :D]
    a_dst = w_attn[0, D:]
    s = h @ a_src                        # [N]
    d = h @ a_dst                        # [N]
    e = s[None, :] + d[:, None]          # [N_dst, N_src]
    e = jnp.where(e > 0, e, 0.01 * e)
    mask = adj > 0
    e = jnp.where(mask, e, NEG_BIG)
    alpha = jax.nn.softmax(e, axis=-1)
    alpha = jnp.where(mask, alpha, 0.0)
    acc = alpha @ h
    return jnp.where(acc > 0, acc, jnp.expm1(jnp.minimum(acc, 0.0)))


if __name__ == "__main__":
    # in_dim == out_dim is required by the module's own shape arithmetic.
    N, D = 256, 16

    key = jax.random.PRNGKey(0)
    k_h, k_w, k_adj = jax.random.split(key, 3)

    # Node features [N, D].
    h = jax.random.normal(k_h, (N, D), dtype=jnp.float32)

    # attn_fc: nn.Linear(2*out_dim, 1, bias=False) -> weight [1, 2D], deterministic init.
    w_attn = jax.random.normal(k_w, (1, 2 * D), dtype=jnp.float32) * 0.1

    # Deterministic random adjacency (adj[i, j] = 1 iff edge j -> i), int8, with
    # self-loops so every node has at least one incoming edge (well-formed DGL graph).
    adj = (jax.random.uniform(k_adj, (N, N)) < 0.1).astype(jnp.int8)
    adj = jnp.maximum(adj, jnp.eye(N, dtype=jnp.int8))

    out = gat_layer(h, w_attn, adj)
    out = jax.block_until_ready(out)

    ref = gat_layer_ref(h, w_attn, adj)
    assert out.shape == (N, D)
    # Tolerance accounts for bf16 MXU aggregation + approx reciprocal (softmax math f32).
    err = float(jnp.max(jnp.abs(out - ref)))
    assert err < 3e-2, f"mismatch vs reference: max abs err = {err}"

    print("KERNEL_OK")
</pallas_src>

<mosaic_0001>
module attributes {stable_mosaic.version = 11 : i64} {
  func.func @gat_kernel(%arg0: i32, %arg1: i32, %arg2: memref<1x128xf32, #tpu.memory_space<vmem>>, %arg3: memref<128x1xf32, #tpu.memory_space<vmem>>, %arg4: memref<128x128xf32, #tpu.memory_space<vmem>>, %arg5: memref<128x128xf32, #tpu.memory_space<vmem>>, %arg6: memref<128x128xi8, #tpu.memory_space<vmem>>, %arg7: memref<128x128xf32, #tpu.memory_space<vmem>>, %arg8: memref<128x1xf32, #tpu.memory_space<vmem>>, %arg9: memref<128x1xf32, #tpu.memory_space<vmem>>, %arg10: memref<128x128xf32, #tpu.memory_space<vmem>>) attributes {dimension_semantics = [#tpu.dimension_semantics<parallel>, #tpu.dimension_semantics<arbitrary>], iteration_bounds = array<i64: 2, 2>, scalar_prefetch = 0 : i64, scratch_operands = 3 : i64, tpu.core_type = #tpu.core_type<tc>, window_params = [{pipeline_mode = #tpu.pipeline_mode<synchronous>, transform_indices = @transform_0, window_bounds = array<i64: 1, 128>}, {pipeline_mode = #tpu.pipeline_mode<synchronous>, transform_indices = @transform_1, window_bounds = array<i64: 128, 1>}, {transform_indices = @transform_2, window_bounds = array<i64: 128, 128>}, {transform_indices = @transform_3, window_bounds = array<i64: 128, 128>}, {transform_indices = @transform_4, window_bounds = array<i64: 128, 128>}, {transform_indices = @transform_5, window_bounds = array<i64: 128, 128>}]} {
    %c0_i32 = arith.constant 0 : i32
    %0 = arith.cmpi eq, %arg1, %c0_i32 : i32
    %1 = arith.extui %0 : i1 to i32
    %c0_i32_0 = arith.constant 0 : i32
    %2 = arith.cmpi ne, %1, %c0_i32_0 : i32
    scf.if %2 {
      %cst_32 = arith.constant -1.000000e+30 : f32
      %52 = vector.broadcast %cst_32 : f32 to vector<128x1xf32>
      %c0_33 = arith.constant 0 : index
      %c0_34 = arith.constant 0 : index
      %53 = vector.load %arg8[%c0_33, %c0_34] : memref<128x1xf32, #tpu.memory_space<vmem>>, vector<128x1xf32>
      tpu.vector_store %arg8[%c0_33, %c0_34], %52 {strides = array<i32>} : memref<128x1xf32, #tpu.memory_space<vmem>>, vector<128x1xf32>,
      %cst_35 = arith.constant 0.000000e+00 : f32
      %54 = vector.broadcast %cst_35 : f32 to vector<128x1xf32>
      %c0_36 = arith.constant 0 : index
      %c0_37 = arith.constant 0 : index
      %55 = vector.load %arg9[%c0_36, %c0_37] : memref<128x1xf32, #tpu.memory_space<vmem>>, vector<128x1xf32>
      tpu.vector_store %arg9[%c0_36, %c0_37], %54 {strides = array<i32>} : memref<128x1xf32, #tpu.memory_space<vmem>>, vector<128x1xf32>,
      %cst_38 = arith.constant 0.000000e+00 : f32
      %56 = vector.broadcast %cst_38 : f32 to vector<128x128xf32>
      %c0_39 = arith.constant 0 : index
      %c0_40 = arith.constant 0 : index
      %57 = vector.load %arg10[%c0_39, %c0_40] : memref<128x128xf32, #tpu.memory_space<vmem>>, vector<128x128xf32>
      tpu.vector_store %arg10[%c0_39, %c0_40], %56 {strides = array<i32>} : memref<128x128xf32, #tpu.memory_space<vmem>>, vector<128x128xf32>,
    } else {
    }
    %c0 = arith.constant 0 : index
    %c0_1 = arith.constant 0 : index
    %3 = vector.load %arg4[%c0, %c0_1] : memref<128x128xf32, #tpu.memory_space<vmem>>, vector<128x128xf32>
    %c0_2 = arith.constant 0 : index
    %c0_3 = arith.constant 0 : index
    %4 = vector.load %arg5[%c0_2, %c0_3] : memref<128x128xf32, #tpu.memory_space<vmem>>, vector<128x128xf32>
    %c0_4 = arith.constant 0 : index
    %c0_5 = arith.constant 0 : index
    %5 = vector.load %arg3[%c0_4, %c0_5] : memref<128x1xf32, #tpu.memory_space<vmem>>, vector<128x1xf32>
    %cst = arith.constant dense<0.000000e+00> : vector<128x1xf32>
    %6 = tpu.matmul %3, %5, %cst {dimension_numbers = #tpu.dot_dimension_numbers<[1], [0], [0], [1], [0, 0, 1, 1], [], []>} : vector<128x128xf32>, vector<128x1xf32>, vector<128x1xf32> -> vector<128x1xf32>
    %c0_6 = arith.constant 0 : index
    %c0_7 = arith.constant 0 : index
    %7 = vector.load %arg2[%c0_6, %c0_7] : memref<1x128xf32, #tpu.memory_space<vmem>>, vector<1x128xf32>
    %cst_8 = arith.constant dense<0.000000e+00> : vector<1x128xf32>
    %8 = tpu.matmul %7, %4, %cst_8 {dimension_numbers = #tpu.dot_dimension_numbers<[1], [1], [0], [0], [0, 0, 1, 0], [], []>} : vector<1x128xf32>, vector<128x128xf32>, vector<1x128xf32> -> vector<1x128xf32>
    %9 = vector.broadcast %8 : vector<1x128xf32> to vector<128x128xf32>
    %10 = vector.broadcast %6 : vector<128x1xf32> to vector<128x128xf32>
    %11 = arith.addf %9, %10 : vector<128x128xf32>
    %cst_9 = arith.constant 0.000000e+00 : f32
    %12 = vector.broadcast %cst_9 : f32 to vector<128x128xf32>
    %13 = arith.cmpf ogt, %11, %12 : vector<128x128xf32>
    %cst_10 = arith.constant 0.00999999977 : f32
    %14 = vector.broadcast %cst_10 : f32 to vector<128x128xf32>
    %15 = arith.mulf %14, %11 : vector<128x128xf32>
    %16 = arith.select %13, %11, %15 : vector<128x128xi1>, vector<128x128xf32>
    %c0_11 = arith.constant 0 : index
    %c0_12 = arith.constant 0 : index
    %17 = vector.load %arg6[%c0_11, %c0_12] : memref<128x128xi8, #tpu.memory_space<vmem>>, vector<128x128xi8>
    %18 = arith.extsi %17 : vector<128x128xi8> to vector<128x128xi32>
    %c0_i32_13 = arith.constant 0 : i32
    %19 = vector.broadcast %c0_i32_13 : i32 to vector<128x128xi32>
    %20 = arith.cmpi sgt, %18, %19 : vector<128x128xi32>
    %cst_14 = arith.constant -1.000000e+30 : f32
    %21 = vector.broadcast %cst_14 : f32 to vector<128x128xf32>
    %22 = arith.select %20, %16, %21 : vector<128x128xi1>, vector<128x128xf32>
    %c0_15 = arith.constant 0 : index
    %c0_16 = arith.constant 0 : index
    %23 = vector.load %arg8[%c0_15, %c0_16] : memref<128x1xf32, #tpu.memory_space<vmem>>, vector<128x1xf32>
    %cst_17 = arith.constant dense<0xFF800000> : vector<128xf32>
    %24 = vector.multi_reduction <maximumf>, %22, %cst_17 [1] : vector<128x128xf32> to vector<128xf32>
    %25 = vector.shape_cast %24 : vector<128xf32> to vector<128x1xf32>
    %26 = arith.maximumf %23, %25 : vector<128x1xf32>
    %27 = arith.subf %23, %26 : vector<128x1xf32>
    %28 = math.exp %27 : vector<128x1xf32>
    %29 = vector.broadcast %26 : vector<128x1xf32> to vector<128x128xf32>
    %30 = arith.subf %22, %29 : vector<128x128xf32>
    %31 = math.exp %30 : vector<128x128xf32>
    %cst_18 = arith.constant 0.000000e+00 : f32
    %32 = vector.broadcast %cst_18 : f32 to vector<128x128xf32>
    %33 = arith.select %20, %31, %32 : vector<128x128xi1>, vector<128x128xf32>
    %c0_19 = arith.constant 0 : index
    %c0_20 = arith.constant 0 : index
    %34 = vector.load %arg9[%c0_19, %c0_20] : memref<128x1xf32, #tpu.memory_space<vmem>>, vector<128x1xf32>
    %35 = arith.mulf %28, %34 : vector<128x1xf32>
    %cst_21 = arith.constant dense<0.000000e+00> : vector<128xf32>
    %36 = vector.multi_reduction <add>, %33, %cst_21 [1] : vector<128x128xf32> to vector<128xf32>
    %37 = vector.shape_cast %36 : vector<128xf32> to vector<128x1xf32>
    %38 = arith.addf %35, %37 : vector<128x1xf32>
    %c0_22 = arith.constant 0 : index
    %c0_23 = arith.constant 0 : index
    %39 = vector.load %arg9[%c0_22, %c0_23] : memref<128x1xf32, #tpu.memory_space<vmem>>, vector<128x1xf32>
    tpu.vector_store %arg9[%c0_22, %c0_23], %38 {strides = array<i32>} : memref<128x1xf32, #tpu.memory_space<vmem>>, vector<128x1xf32>,
    %c0_24 = arith.constant 0 : index
    %c0_25 = arith.constant 0 : index
    %40 = vector.load %arg10[%c0_24, %c0_25] : memref<128x128xf32, #tpu.memory_space<vmem>>, vector<128x128xf32>
    %41 = vector.broadcast %28 : vector<128x1xf32> to vector<128x128xf32>
    %42 = arith.mulf %41, %40 : vector<128x128xf32>
    %43 = arith.truncf %33 : vector<128x128xf32> to vector<128x128xbf16>
    %44 = arith.truncf %4 : vector<128x128xf32> to vector<128x128xbf16>
    %cst_26 = arith.constant dense<0.000000e+00> : vector<128x128xf32>
    %45 = tpu.matmul %43, %44, %cst_26 {dimension_numbers = #tpu.dot_dimension_numbers<[1], [0], [0], [1], [0, 0, 1, 1], [], []>} : vector<128x128xbf16>, vector<128x128xbf16>, vector<128x128xf32> -> vector<128x128xf32>
    %46 = arith.addf %42, %45 : vector<128x128xf32>
    %c0_27 = arith.constant 0 : index
    %c0_28 = arith.constant 0 : index
    %47 = vector.load %arg10[%c0_27, %c0_28] : memref<128x128xf32, #tpu.memory_space<vmem>>, vector<128x128xf32>
    tpu.vector_store %arg10[%c0_27, %c0_28], %46 {strides = array<i32>} : memref<128x128xf32, #tpu.memory_space<vmem>>, vector<128x128xf32>,
    %c0_29 = arith.constant 0 : index
    %c0_30 = arith.constant 0 : index
    %48 = vector.load %arg8[%c0_29, %c0_30] : memref<128x1xf32, #tpu.memory_space<vmem>>, vector<128x1xf32>
    tpu.vector_store %arg8[%c0_29, %c0_30], %26 {strides = array<i32>} : memref<128x1xf32, #tpu.memory_space<vmem>>, vector<128x1xf32>,
    %c1_i32 = arith.constant 1 : i32
    %49 = arith.cmpi eq, %arg1, %c1_i32 : i32
    %50 = arith.extui %49 : i1 to i32
    %c0_i32_31 = arith.constant 0 : i32
    %51 = arith.cmpi ne, %50, %c0_i32_31 : i32
    scf.if %51 {
      %c0_32 = arith.constant 0 : index
      %c0_33 = arith.constant 0 : index
      %52 = vector.load %arg9[%c0_32, %c0_33] : memref<128x1xf32, #tpu.memory_space<vmem>>, vector<128x1xf32>
      %cst_34 = arith.constant 1.000000e-30 : f32
      %53 = vector.broadcast %cst_34 : f32 to vector<128x1xf32>
      %54 = arith.maximumf %52, %53 : vector<128x1xf32>
      %55 = tpu.reciprocal %54 {approx = true} : vector<128x1xf32> -> vector<128x1xf32>
      %c0_35 = arith.constant 0 : index
      %c0_36 = arith.constant 0 : index
      %56 = vector.load %arg10[%c0_35, %c0_36] : memref<128x128xf32, #tpu.memory_space<vmem>>, vector<128x128xf32>
      %57 = vector.broadcast %55 : vector<128x1xf32> to vector<128x128xf32>
      %58 = arith.mulf %56, %57 : vector<128x128xf32>
      %cst_37 = arith.constant 0.000000e+00 : f32
      %59 = vector.broadcast %cst_37 : f32 to vector<128x128xf32>
      %60 = arith.cmpf ogt, %58, %59 : vector<128x128xf32>
      %cst_38 = arith.constant 0.000000e+00 : f32
      %61 = vector.broadcast %cst_38 : f32 to vector<128x128xf32>
      %62 = arith.minimumf %58, %61 : vector<128x128xf32>
      %63 = math.exp %62 : vector<128x128xf32>
      %cst_39 = arith.constant 1.000000e+00 : f32
      %64 = vector.broadcast %cst_39 : f32 to vector<128x128xf32>
      %65 = arith.subf %63, %64 : vector<128x128xf32>
      %66 = arith.select %60, %58, %65 : vector<128x128xi1>, vector<128x128xf32>
      %c0_40 = arith.constant 0 : index
      %c0_41 = arith.constant 0 : index
      %67 = vector.load %arg7[%c0_40, %c0_41] : memref<128x128xf32, #tpu.memory_space<vmem>>, vector<128x128xf32>
      tpu.vector_store %arg7[%c0_40, %c0_41], %66 {strides = array<i32>} : memref<128x128xf32, #tpu.memory_space<vmem>>, vector<128x128xf32>,
    } else {
    }
    return
  }
  func.func @transform_0(%arg0: i32, %arg1: i32) -> (i32, i32) {
    %c0_i32 = arith.constant 0 : i32
    %c0_i32_0 = arith.constant 0 : i32
    %c0_i32_1 = arith.constant 0 : i32
    return %c0_i32, %c0_i32_0 : i32, i32
  }
  func.func @transform_1(%arg0: i32, %arg1: i32) -> (i32, i32) {
    %c0_i32 = arith.constant 0 : i32
    %c0_i32_0 = arith.constant 0 : i32
    %c0_i32_1 = arith.constant 0 : i32
    return %c0_i32, %c0_i32_0 : i32, i32
  }
  func.func @transform_2(%arg0: i32, %arg1: i32) -> (i32, i32) {
    %c0_i32 = arith.constant 0 : i32
    %c0_i32_0 = arith.constant 0 : i32
    return %arg0, %c0_i32 : i32, i32
  }
  func.func @transform_3(%arg0: i32, %arg1: i32) -> (i32, i32) {
    %c0_i32 = arith.constant 0 : i32
    %c0_i32_0 = arith.constant 0 : i32
    return %arg1, %c0_i32 : i32, i32
  }
  func.func @transform_4(%arg0: i32, %arg1: i32) -> (i32, i32) {
    %c0_i32 = arith.constant 0 : i32
    return %arg0, %arg1 : i32, i32
  }
  func.func @transform_5(%arg0: i32, %arg1: i32) -> (i32, i32) {
    %c0_i32 = arith.constant 0 : i32
    %c0_i32_0 = arith.constant 0 : i32
    return %arg0, %c0_i32 : i32, i32
  }
}

</mosaic_0001>

<bundles_post_ra>
// kernel: tpu_custom_call.1
= control target key start
LH: loop header
LB: loop body
LE: loop exit
PB: predicated region body
PF: predicated region fallthrough
CT: control target
= control target key end

     0   :  { %s3782_s0 = inlined_call_operand.vmem [shape: f32[1,128], index: 0, kind: input, shape index: {}]   ;;  %s3783_s1 = inlined_call_operand.vmem [shape: f32[128,1], index: 1, kind: input, shape index: {}]   ;;  %s3784_s2 = inlined_call_operand.hbm [shape: f32[256,128], index: 2, kind: input, shape index: {}]   ;;  %s3785_s3 = inlined_call_operand.hbm [shape: f32[256,128], index: 3, kind: input, shape index: {}]   ;;  %s3786_s4 = inlined_call_operand.vmem [shape: s8[256,256], index: 4, kind: input, shape index: {}]   ;;  %s3787_s5 = inlined_call_operand.hbm [shape: f32[256,128], index: 5, kind: output, shape index: {}]  }
   0x1   :  { %3807 = sst [smem:[#allocation25_spill]] %s3782_s0 }
   0x2   :  { %3808 = sst [smem:[#allocation26_spill]] %s3784_s2 }
   0x3   :  { %3809 = sst [smem:[#allocation27_spill]] %s3787_s5 }
   0x4   :  { %10 = vsyncpa [#allocation6], 0 }
   0x5   :  { %12 = vsyncpa [#allocation6 + $0x1], 0 }
   0x6   :  { %13 = vsyncpa [#allocation9], 0 }
   0x7   :  { %15 = vsyncpa [#allocation9 + $0x1], 0 }
   0x8   :  { %16 = vsyncpa [#allocation7], 0 }
   0x9   :  { %18 = vsyncpa [#allocation7 + $0x1], 0  ;;  %s2747_s18 = smov 0   ;;  %s2749_s19 = smov 0  }
   0xa   :  { %s2751_s20 = smov 0   ;;  %s2753_s21 = smov 0  }
   0xb   :  { %s2755_s22 = smov 0   ;;  %s2757_s23 = smov 0  }
   0xc   :  { %s2759_s24 = smov 0   ;;  %s2761_s25 = smov 0  }
   0xd   :  { %s2763_s26 = smov 0   ;;  %s2765_s27 = smov 0  }
   0xe   :  { %s2767_s28 = smov 0   ;;  %s2769_s29 = smov 0  }
   0xf   :  { %s2771_s30 = smov 0  }
  0x10 LB: > { %3810 = sst [smem:[#allocation15_spill]] %s2673_s23  ;;  %s3788_s6 = sadd.s32 4294967295, %s2701_s30   ;;  %s2701_s30 = sphi %s2771_s30, %s24_s30   ;;  %s2697_s29 = sphi %s2769_s29, %s3900_s29   ;;  %s2693_s28 = sphi %s2767_s28, %s3899_s28   ;;  %s2689_s27 = sphi %s2765_s27, %s3898_s27   ;;  %s2685_s26 = sphi %s2763_s26, %s3897_s26   ;;  %s2681_s25 = sphi %s2761_s25, %s3896_s25   ;;  %s2677_s24 = sphi %s2759_s24, %s3895_s24   ;;  %s2673_s23 = sphi %s2757_s23, %s3894_s23   ;;  %s2669_s22 = sphi %s2755_s22, %s3893_s22   ;;  %s2665_s21 = sphi %s2753_s21, %s3892_s21   ;;  %s2661_s20 = sphi %s2751_s20, %s3891_s20   ;;  %s2657_s19 = sphi %s2749_s19, %s3890_s19   ;;  %s2653_s18 = sphi %s2747_s18, %s3889_s18  }
  0x11   : > { %3811 = sst [smem:[#allocation16_spill]] %s2681_s25  ;;  %s33_s8 = sadd.s32 1, %s2693_s28 }
  0x12   : > { %3812 = sst [smem:[#allocation17_spill]] %s2689_s27  ;;  %s36_s9 = sadd.s32 1, %s2697_s29 }
  0x13   : > { %p34_p0 = scmp.ge.s32.totalorder %s33_s8, 2  ;;  %s85_s10 = sadd.s32 1, %s2681_s25 }
  0x14   : > { %p92_p1 = scmp.ne.s32.totalorder %s2681_s25, %s2677_s24  ;;  %p93_p2 = scmp.eq.s32.totalorder %s2701_s30, 0 }
  0x15   : > { %s3902_s8 = smov (%p34_p0, %s33_s8), 0  ;;  %s3904_s9 = smov (!%p34_p0, %s36_s9), %s2697_s29 }
  0x16   : > { %3813 = sst [smem:[#allocation18_spill]] %s3902_s8  ;;  %p2828_p3 = por %p93_p2, %p92_p1 }
  0x17   : > { %p3792_p4 = scmp.ne.s32.totalorder %s2677_s24, %s2673_s23  ;;  %p38_p5 = scmp.ge.s32.totalorder %s3904_s9, 2 }
  0x18   : > { %p2836_p6 = scmp.eq.s32.totalorder %s3788_s6, 0  ;;  %s108_s13 = ssub.s32 %s2693_s28, %s3902_s8 }
  0x19   : > { %s111_s14 = sadd.s32 1, %s2669_s22  ;;  %s3906_s9 = smov (%p38_p5, %s3904_s9), 0 }
  0x1a   : > { %3816 = sst [smem:[#allocation19_spill]] %s3906_s9  ;;  %p2850_p7 = por %p2836_p6, %p3792_p4 }
  0x1b   : > { %p109_p8 = scmp.eq.s32.totalorder %s108_s13, 0  ;;  %s82_s16 = ssub.s32 %s2697_s29, %s3906_s9 }
  0x1c   : > { %s3817_s15 = scalar_select %p2850_p7, 1, 0 }
  0x1d   : > { %p118_p9 = scmp.ne.s32.totalorder %s2669_s22, %s2665_s21  ;;  %p83_p10 = scmp.eq.s32.totalorder %s82_s16, 0 }
  0x1e   : > { %p124_p11 = scmp.ne.s32.totalorder %s2665_s21, %s2661_s20  ;;  %s136_s9 = sor.u32 %s108_s13, %s82_s16 }
  0x1f   : > { %s2861_s17 = scalar_select %p109_p8, %s2669_s22, %s111_s14  }
  0x20   : > { %s2864_s7 = scalar_select %p83_p10, %s2681_s25, %s85_s10  }
  0x21   : > { %3818 = sst [smem:[#allocation20_spill]] %s2861_s17  ;;  %p2868_p12 = por %p118_p9, %p93_p2 }
  0x22   : > { %3819 = sst [smem:[#allocation21_spill]] %s2864_s7  ;;  %p2874_p13 = por %p124_p11, %p2836_p6 }
  0x23   : > { %s139_s5 = sadd.s32 1, %s2657_s19  ;;  %p137_p0 = scmp.eq.s32.totalorder %s136_s9, 0 }
  0x24   : > { %s3821_s8 = scalar_select %p2874_p13, 1, 0 }
  0x25   : > { %p146_p5 = scmp.ne.s32.totalorder %s2657_s19, %s2653_s18  ;;  %s3822_s27 = sadd.s32 4294967295, %s2701_s30  }
  0x26   : > { %p176_p4 = scmp.eq.s32.totalorder %s3822_s27, 3  ;;  %s3823_s20 = sadd.s32 4294967294, %s2701_s30  }
  0x27   : > { %p182_p8 = scmp.eq.s32.totalorder %s3823_s20, 3  ;;  %p2890_p9 = por %p146_p5, %p93_p2 }
  0x28   : > { %s2886_s10 = scalar_select %p137_p0, %s2657_s19, %s139_s5  }
  0x29   : > { %s3825_s14 = scalar_select %p2890_p9, 1, 0 }
  0x2a   : > { %3824 = sst [smem:[#allocation22_spill]] %s2886_s10  ;;  %p2897_p6 = por %p176_p4, %p92_p1 }
  0x2b   : > { %p3828_p10 = scmp.ne.s32.totalorder %s2677_s24, %s2673_s23  ;;  %p1934_p13 = scmp.ge.s32.totalorder %s2701_s30, 4 }
  0x2c   : > { %s3826_s12 = scalar_select %p2897_p6, 1, 0 }
  0x2d   : > { %p2904_p11 = por %p182_p8, %p3828_p10  ;;  %204 = sbr.rel (%p1934_p13) target bundleno = 112 (0x70), region = 24 }
  0x2e   : > { %3827 = sst [smem:[#allocation23_spill]] %s3826_s12  ;;  %s208_s5 = sand.u32 (!%p1934_p13), 1, %s2681_s25  }
  0x2f   : > { %s3829_s9 = scalar_select %p2904_p11, 1, 0 }
  0x30   : > { %s1997_s27 = sshll.u32 (!%p1934_p13), %s2697_s29, 11  ;;  %s1935_s13 = sshll.u32 (!%p1934_p13), %s208_s5, 7 }
  0x31   : > { %3830 = sst [smem:[#allocation24_spill]] %s3829_s9  ;;  %s3831_s2 = sld [smem:[#allocation26_spill]] (!%p1934_p13) }
  0x32   : > { %s212_s17 = scalar_lea.vmem (!%p1934_p13), [#allocation5], %s1935_s13  ;;  %s2918_s9 = scalar_lea.sflag (!%p1934_p13), [#allocation6], %s208_s5 }
  0x33   : > { %s219_s10 = sshll.u32 (!%p1934_p13), %s212_s17, 4  ;;  %s2916_s10 = int_to_ptr.vmem [resolvable:$true] %s219_s10 }
  0x37   : > { %s2914_s7 = scalar_lea.hbm %s3831_s2, %s1997_s27  ;;  %s2507_s27 = scalar_lea.hbm %s3831_s2, 4096 }
  0x38   : > { %s2503_s23 = scalar_lea.hbm %s2914_s7, 2048  ;;  %p2508_p13 = scmp.lt.u32.totalorder %s2914_s7, %s3831_s2 }
  0x39   : > { %p2504_p1 = scmp.ne.s32.totalorder %s2914_s7, %s2503_s23  ;;  %p2509_p0 = scmp.lt.u32.totalorder %s2507_s27, %s2503_s23 }
  0x3a   : > { %p2511_p8 = scmp.lt.u32.totalorder %s2503_s23, %s2914_s7 }
  0x3b   : > { %p2505_p2 = pnand %p2504_p1, %p2828_p3  ;;  %p2510_p5 = por %p2509_p0, %p2508_p13 }
  0x3d   : > { %p2506_p4 = pneg %p2505_p2  ;;  %p2512_p10 = por %p2511_p8, %p2510_p5 }
  0x3f   : > { %p2513_p11 = pnand %p2512_p10, %p2506_p4 }
  0x41   : > { %2516 = shalt.err (!%p2513_p11)
}
  0x42   : > { %s2517_s17 = scalar_lea.vmem %s2916_s10, 2048  ;;  %s2703_s25 = smov [#allocation5]  }
  0x43   : > { %p2518_p1 = scmp.ne.s32.totalorder %s2916_s10, %s2517_s17  ;;  %s2521_s12 = sshll.u32 %s2703_s25, 4  ;;  %s2522_s12 = int_to_ptr.vmem [resolvable:$false] %s2521_s12 }
  0x44   : > { %s2523_s5 = scalar_lea.vmem %s2522_s12, 4096  ;;  %p2524_p7 = scmp.lt.s32.totalorder %s2916_s10, %s2522_s12 }
  0x45   : > { %p2519_p2 = pnand %p2518_p1, %p2828_p3  ;;  %p2525_p9 = scmp.lt.s32.totalorder %s2523_s5, %s2517_s17 }
  0x47   : > { %p2520_p6 = pneg %p2519_p2  ;;  %p2526_p13 = por %p2525_p9, %p2524_p7 }
  0x49   : > { %p2527_p0 = pnand %p2526_p13, %p2520_p6 }
  0x4b   : > { %2530 = shalt.err (!%p2527_p0)
}
  0x4c   : > { %s2704_s23 = smov 128   ;;  %s2705_s13 = smov 8  }
  0x4d   : > { %2245 = dma.hbm_to_vmem [thread:$0]  (%p2828_p3), %s2914_s7, 2048, %s2916_s10, %s2918_s9, %s2704_s23, %s2704_s23, %s2705_s13  }
  0x4e   : > { %s229_s27 = sand.u32 1, %s2669_s22   ;;  %s1998_s16 = sshll.u32 %s2693_s28, 11 }
  0x4f   : > { %s1938_s20 = sshll.u32 %s229_s27, 7  ;;  %s2950_s12 = scalar_lea.hbm %s3785_s3, %s1998_s16 }
  0x50   : > { %s233_s5 = scalar_lea.vmem [#allocation8], %s1938_s20  ;;  %s2954_s11 = scalar_lea.sflag [#allocation9], %s229_s27 }
  0x51   : > { %s240_s2 = sshll.u32 %s233_s5, 4  ;;  %s2531_s0 = scalar_lea.hbm %s2950_s12, 2048  ;;  %s2952_s2 = int_to_ptr.vmem [resolvable:$true] %s240_s2 }
  0x52   : > { %p2532_p3 = scmp.ne.s32.totalorder %s2950_s12, %s2531_s0  ;;  %s2535_s9 = scalar_lea.hbm %s3785_s3, 4096 }
  0x53   : > { %p2536_p6 = scmp.lt.u32.totalorder %s2950_s12, %s3785_s3  ;;  %p2537_p11 = scmp.lt.u32.totalorder %s2535_s9, %s2531_s0 }
  0x54   : > { %p2533_p7 = pnand %p2532_p3, %p2868_p12  ;;  %p2539_p5 = scmp.lt.u32.totalorder %s2531_s0, %s2950_s12 }
  0x55   : > { %p2538_p4 = por %p2537_p11, %p2536_p6 }
  0x56   : > { %p2534_p9 = pneg %p2533_p7 }
  0x57   : > { %p2540_p8 = por %p2539_p5, %p2538_p4 }
  0x59   : > { %p2541_p10 = pnand %p2540_p8, %p2534_p9 }
  0x5b   : > { %2544 = shalt.err (!%p2541_p10)
}
  0x5c   : > { %s2545_s27 = scalar_lea.vmem %s2952_s2, 2048  ;;  %s2706_s20 = smov [#allocation8]  }
  0x5d   : > { %p2546_p1 = scmp.ne.s32.totalorder %s2952_s2, %s2545_s27  ;;  %s2549_s25 = sshll.u32 %s2706_s20, 4  ;;  %s2550_s25 = int_to_ptr.vmem [resolvable:$false] %s2549_s25 }
  0x5e   : > { %s2551_s5 = scalar_lea.vmem %s2550_s25, 4096  ;;  %p2552_p0 = scmp.lt.s32.totalorder %s2952_s2, %s2550_s25 }
  0x5f   : > { %p2547_p2 = pnand %p2546_p1, %p2868_p12  ;;  %p2553_p3 = scmp.lt.s32.totalorder %s2551_s5, %s2545_s27 }
  0x61   : > { %p2548_p13 = pneg %p2547_p2  ;;  %p2554_p7 = por %p2553_p3, %p2552_p0 }
  0x63   : > { %p2555_p6 = pnand %p2554_p7, %p2548_p13 }
  0x65   : > { %2558 = shalt.err (!%p2555_p6)
}
  0x66   : > { %2246 = dma.hbm_to_vmem [thread:$0]  (%p2868_p12), %s2950_s12, 2048, %s2952_s2, %s2954_s11, %s2704_s23, %s2704_s23, %s2705_s13  }
  0x67   : > { %p3832_p9 = scmp.ne.s32.totalorder %s3825_s14, 0 }
  0x68   : > { %s251_s0 = sand.u32 (%p3832_p9), 1, %s2657_s19   ;;  %s1999_s7 = sshll.u32 (%p3832_p9), %s2697_s29, 3 }
  0x69   : > { %249 = sbr.rel (!%p3832_p9) target bundleno = 112 (0x70), region = 36  ;;  %s1941_s10 = sshll.u32 (%p3832_p9), %s251_s0, 5 }
  0x6a   : > { %s256_s9 = sadd.s32 (%p3832_p9), %s2693_s28, %s1999_s7  ;;  %s253_s20 = scalar_lea.vmem (%p3832_p9), [#allocation10], %s1941_s10 }
  0x6b   : > { %s1944_s16 = sshll.u32 (%p3832_p9), %s256_s9, 3 }
  0x6c   : > { %s258_s27 = scalar_lea.vmem (%p3832_p9), %s3786_s4, %s1944_s16 }
  0x6d   : > { %v292_v0 = vld [vmem:[%s258_s27] sm:$0xff] (%p3832_p9)  ;;  %v294_v1 = vld [vmem:[%s258_s27 + $0x10] sm:$0xff] (%p3832_p9) }
  0x6e   : > { %v296_v2 = vld [vmem:[%s258_s27 + $0x20] sm:$0xff] (%p3832_p9)  ;;  %293 = vst [vmem:[%s253_s20] sm:$0xff] (%p3832_p9), %v292_v0  ;;  %295 = vst [vmem:[%s253_s20 + $0x8] sm:$0xff] (%p3832_p9), %v294_v1  ;;  %v298_v3 = vld [vmem:[%s258_s27 + $0x30] sm:$0xff] (%p3832_p9) }
  0x6f   : > { %297 = vst [vmem:[%s253_s20 + $0x10] sm:$0xff] (%p3832_p9), %v296_v2  ;;  %299 = vst [vmem:[%s253_s20 + $0x18] sm:$0xff] (%p3832_p9), %v298_v3 }
  0x70 PF: > { %p1945_p12 = scmp.ge.s32.totalorder %s2701_s30, 1  ;;  %p304_p11 = scmp.lt.s32.totalorder %s2701_s30, 5 }
  0x72   : > { %p305_p4 = pnand %p1945_p12, %p304_p11 }
  0x73   : > { %s2992_s2 = sand.u32 (!%p305_p4), 1, %s2677_s24   ;;  %p3833_p5 = scmp.ne.s32.totalorder (!%p305_p4), %s3817_s15, 0 }
  0x74   : > { %308 = sbr.rel (%p305_p4) target bundleno = 1267 (0x4f3), region = 74  ;;  %s1946_s14 = sshll.u32 (!%p305_p4), %s2992_s2, 7 }
  0x75   : > { %s311_s23 = scalar_lea.sflag (!%p305_p4), [#allocation6], %s2992_s2  ;;  %s2996_s13 = scalar_lea.vmem (!%p305_p4), [#allocation5], %s1946_s14 }
  0x7b   : > { %2640 = dma.done.wait (%p3833_p5), %s311_s23, 2048  }
  0x7c   : > { %2642 = vsyncadd (%p3833_p5), %s311_s23, 4294965248  ;;  %s319_s12 = sand.u32 1, %s2665_s21   ;;  %p3834_p8 = scmp.ne.s32.totalorder %s3821_s8, 0 }
  0x7d   : > { %s1947_s11 = sshll.u32 %s319_s12, 7  ;;  %s320_s25 = scalar_lea.sflag [#allocation9], %s319_s12 }
  0x7e   : > { %s3003_s5 = scalar_lea.vmem [#allocation8], %s1947_s11 }
  0x7f   : > { %2644 = dma.done.wait (%p3834_p8), %s320_s25, 2048  }
  0x80   : > { %2646 = vsyncadd (%p3834_p8), %s320_s25, 4294965248  ;;  %s329_s0 = sand.u32 1, %s2653_s18   ;;  %s3012_s9 = scalar_lea.vmem [#allocation11], %s1946_s14 }
  0x81   : > { %s1948_s7 = sshll.u32 %s329_s0, 5  ;;  %p1950_p10 = scmp.ne.s32.totalorder %s2685_s26, 0 }
  0x82   : > { %s3010_s10 = scalar_lea.vmem [#allocation10], %s1948_s7  ;;  %vm375_vm0 = vcmask (!%p1950_p10), 7168   ;;  %v2707_v4 = vmov (!%p1950_p10), -1e+30   ;;  %v2708_v5 = vmov (!%p1950_p10), 0.0  }
  0x83   : > { %374 = sbr.rel (%p1950_p10) target bundleno = 155 (0x9b), region = 90  ;;  %376 = vst.msk [vmem:[#allocation2] sm:$0xff] (!%p1950_p10), %vm375_vm0, %v2707_v4  ;;  %377 = vst.msk [vmem:[#allocation2 + $0x8] sm:$0xff] (!%p1950_p10), %vm375_vm0, %v2707_v4 }
  0x84   : > { %378 = vst.msk [vmem:[#allocation2 + $0x10] sm:$0xff] (!%p1950_p10), %vm375_vm0, %v2707_v4  ;;  %379 = vst.msk [vmem:[#allocation2 + $0x18] sm:$0xff] (!%p1950_p10), %vm375_vm0, %v2707_v4 }
  0x85   : > { %380 = vst.msk [vmem:[#allocation2 + $0x20] sm:$0xff] (!%p1950_p10), %vm375_vm0, %v2707_v4  ;;  %381 = vst.msk [vmem:[#allocation2 + $0x28] sm:$0xff] (!%p1950_p10), %vm375_vm0, %v2707_v4 }
  0x86   : > { %382 = vst.msk [vmem:[#allocation2 + $0x30] sm:$0xff] (!%p1950_p10), %vm375_vm0, %v2707_v4  ;;  %383 = vst.msk [vmem:[#allocation2 + $0x38] sm:$0xff] (!%p1950_p10), %vm375_vm0, %v2707_v4 }
  0x87   : > { %384 = vst.msk [vmem:[#allocation2 + $0x40] sm:$0xff] (!%p1950_p10), %vm375_vm0, %v2707_v4  ;;  %385 = vst.msk [vmem:[#allocation2 + $0x48] sm:$0xff] (!%p1950_p10), %vm375_vm0, %v2707_v4 }
  0x88   : > { %386 = vst.msk [vmem:[#allocation2 + $0x50] sm:$0xff] (!%p1950_p10), %vm375_vm0, %v2707_v4  ;;  %387 = vst.msk [vmem:[#allocation2 + $0x58] sm:$0xff] (!%p1950_p10), %vm375_vm0, %v2707_v4 }
  0x89   : > { %388 = vst.msk [vmem:[#allocation2 + $0x60] sm:$0xff] (!%p1950_p10), %vm375_vm0, %v2707_v4  ;;  %389 = vst.msk [vmem:[#allocation2 + $0x68] sm:$0xff] (!%p1950_p10), %vm375_vm0, %v2707_v4 }
  0x8a   : > { %390 = vst.msk [vmem:[#allocation2 + $0x70] sm:$0xff] %vm375_vm0, %v2707_v4  ;;  %391 = vst.msk [vmem:[#allocation2 + $0x78] sm:$0xff] %vm375_vm0, %v2707_v4 }
  0x8b   : > { %392 = vst.msk [vmem:[#allocation3] sm:$0xff] %vm375_vm0, %v2708_v5  ;;  %393 = vst.msk [vmem:[#allocation3 + $0x8] sm:$0xff] %vm375_vm0, %v2708_v5 }
  0x8c   : > { %394 = vst.msk [vmem:[#allocation3 + $0x10] sm:$0xff] %vm375_vm0, %v2708_v5  ;;  %395 = vst.msk [vmem:[#allocation3 + $0x18] sm:$0xff] %vm375_vm0, %v2708_v5 }
  0x8d   : > { %396 = vst.msk [vmem:[#allocation3 + $0x20] sm:$0xff] %vm375_vm0, %v2708_v5  ;;  %397 = vst.msk [vmem:[#allocation3 + $0x28] sm:$0xff] %vm375_vm0, %v2708_v5 }
  0x8e   : > { %398 = vst.msk [vmem:[#allocation3 + $0x30] sm:$0xff] %vm375_vm0, %v2708_v5  ;;  %399 = vst.msk [vmem:[#allocation3 + $0x38] sm:$0xff] %vm375_vm0, %v2708_v5 }
  0x8f   : > { %400 = vst.msk [vmem:[#allocation3 + $0x40] sm:$0xff] %vm375_vm0, %v2708_v5  ;;  %401 = vst.msk [vmem:[#allocation3 + $0x48] sm:$0xff] %vm375_vm0, %v2708_v5 }
  0x90   : > { %402 = vst.msk [vmem:[#allocation3 + $0x50] sm:$0xff] %vm375_vm0, %v2708_v5  ;;  %403 = vst.msk [vmem:[#allocation3 + $0x58] sm:$0xff] %vm375_vm0, %v2708_v5 }
  0x91   : > { %404 = vst.msk [vmem:[#allocation3 + $0x60] sm:$0xff] %vm375_vm0, %v2708_v5  ;;  %405 = vst.msk [vmem:[#allocation3 + $0x68] sm:$0xff] %vm375_vm0, %v2708_v5 }
  0x92   : > { %406 = vst.msk [vmem:[#allocation3 + $0x70] sm:$0xff] %vm375_vm0, %v2708_v5  ;;  %407 = vst.msk [vmem:[#allocation3 + $0x78] sm:$0xff] %vm375_vm0, %v2708_v5 }
  0x93   : > { %408 = vst [vmem:[#allocation4] sm:$0xff] %v2708_v5  ;;  %409 = vst [vmem:[#allocation4 + $0x8] sm:$0xff] %v2708_v5 }
  0x94   : > { %410 = vst [vmem:[#allocation4 + $0x10] sm:$0xff] %v2708_v5  ;;  %411 = vst [vmem:[#allocation4 + $0x18] sm:$0xff] %v2708_v5 }
  0x95   : > { %412 = vst [vmem:[#allocation4 + $0x20] sm:$0xff] %v2708_v5  ;;  %413 = vst [vmem:[#allocation4 + $0x28] sm:$0xff] %v2708_v5 }
  0x96   : > { %414 = vst [vmem:[#allocation4 + $0x30] sm:$0xff] %v2708_v5  ;;  %415 = vst [vmem:[#allocation4 + $0x38] sm:$0xff] %v2708_v5 }
  0x97   : > { %416 = vst [vmem:[#allocation4 + $0x40] sm:$0xff] %v2708_v5  ;;  %417 = vst [vmem:[#allocation4 + $0x48] sm:$0xff] %v2708_v5 }
  0x98   : > { %418 = vst [vmem:[#allocation4 + $0x50] sm:$0xff] %v2708_v5  ;;  %419 = vst [vmem:[#allocation4 + $0x58] sm:$0xff] %v2708_v5 }
  0x99   : > { %420 = vst [vmem:[#allocation4 + $0x60] sm:$0xff] %v2708_v5  ;;  %421 = vst [vmem:[#allocation4 + $0x68] sm:$0xff] %v2708_v5 }
  0x9a   : > { %422 = vst [vmem:[#allocation4 + $0x70] sm:$0xff] %v2708_v5  ;;  %423 = vst [vmem:[#allocation4 + $0x78] sm:$0xff] %v2708_v5 }
  0x9b PF: > { %v456_v6 = vld [vmem:[%s3783_s1] sm:$0xff]  ;;  %v457_v7 = vld [vmem:[%s3783_s1 + $0x8] sm:$0xff]  ;;  %v458_v8 = vld [vmem:[%s3783_s1 + $0x10] sm:$0xff]  ;;  %v2709_v11 = vmov 0.0|0.0   ;;  %vm2710_vm1 = vmmov 0   ;;  %v2711_v12 = vmov 0.0  }
  0x9c   : > { %v2189_v9 = vpack.c.bf16 %v457_v7, %v456_v6  ;;  %v459_v10 = vld [vmem:[%s3783_s1 + $0x18] sm:$0xff]  ;;  %2221 = vmatprep.subr.bf16.mxu1 %v2709_v11  ;;  %2154 = vmatprep.mubr.msk.f32.mxu1 %vm2710_vm1, %v2711_v12  ;;  %v460_v14 = vld [vmem:[%s3783_s1 + $0x20] sm:$0xff]  ;;  %v461_v15 = vld [vmem:[%s3783_s1 + $0x28] sm:$0xff]  ;;  %s3835_s17 = sld [smem:[#allocation25_spill]]  ;;  %p1975_p1 = scmp.ne.s32.totalorder %s2685_s26, 1 }
  0x9d   : > { %v2193_v13 = vpack.c.bf16 %v459_v10, %v458_v8  ;;  %v2197_v16 = vpack.c.bf16 %v461_v15, %v460_v14  ;;  %v424_v17 = vld [vmem:[%s2996_s13] sm:$0xff]  ;;  %v462_v18 = vld [vmem:[%s3783_s1 + $0x30] sm:$0xff]  ;;  %v463_v19 = vld [vmem:[%s3783_s1 + $0x38] sm:$0xff] }
  0x9e   : > { %2190 = vmatprep.subr.bf16.mxu0 %v2189_v9  ;;  %2098 = vmatprep.mubr.f32.mxu0 %v424_v17  ;;  %v2201_v20 = vpack.c.bf16 %v463_v19, %v462_v18  ;;  %v464_v21 = vld [vmem:[%s3783_s1 + $0x40] sm:$0xff]  ;;  %v465_v22 = vld [vmem:[%s3783_s1 + $0x48] sm:$0xff]  ;;  %v466_v27 = vld [vmem:[%s3783_s1 + $0x50] sm:$0xff] }
  0x9f   : > { %2192 = vmatpush3.bf16.msra.mxu0 %v2189_v9  ;;  %v440_v23 = vld [vmem:[%s3003_s5] sm:$0xff]  ;;  %v441_v24 = vld [vmem:[%s3003_s5 + $0x8] sm:$0xff]  ;;  %v2205_v26 = vpack.c.bf16 %v465_v22, %v464_v21  ;;  %v467_v28 = vld [vmem:[%s3783_s1 + $0x58] sm:$0xff]  ;;  %v2712_v9 = vmov 0  }
  0xa0   : > { %2194 = vmatprep.subr.bf16.mxu0 %v2193_v13  ;;  %v2222_v25 = vpack.c.bf16 %v441_v24, %v440_v23  ;;  %v442_v29 = vld [vmem:[%s3003_s5 + $0x10] sm:$0xff]  ;;  %v443_v30 = vld [vmem:[%s3003_s5 + $0x18] sm:$0xff]  ;;  %v2209_v31 = vpack.c.bf16 %v467_v28, %v466_v27  ;;  %v468_v32 = vld [vmem:[%s3783_s1 + $0x60] sm:$0xff]  ;;  %2371 = vset.pattern.permute.xlu0 %v2712_v9  ;;  %v688_v28 = vlaneseq }
  0xa1   : > { %v469_v33 = vld [vmem:[%s3783_s1 + $0x68] sm:$0xff]  ;;  %v2225_v34 = vpack.c.bf16 %v443_v30, %v442_v29  ;;  %v470_v36 = vld [vmem:[%s3783_s1 + $0x70] sm:$0xff]  ;;  %v471_v37 = vld [vmem:[%s3783_s1 + $0x78] sm:$0xff]  ;;  %2372 = vset.pattern.permute.xlu1 %v2712_v9 }
  0xa2   : > { %2223 = vmatpush3.bf16.xpose.msra.mxu1 %v2222_v25  ;;  %v2213_v35 = vpack.c.bf16 %v469_v33, %v468_v32  ;;  %v444_v38 = vld [vmem:[%s3003_s5 + $0x20] sm:$0xff]  ;;  %v445_v39 = vld [vmem:[%s3003_s5 + $0x28] sm:$0xff]  ;;  %v2217_v40 = vpack.c.bf16 %v471_v37, %v470_v36  ;;  %v446_v42 = vld [vmem:[%s3003_s5 + $0x30] sm:$0xff]  ;;  %v689_v29 = vshrl.u32 %v688_v28, 7 }
  0xa3   : > { %2196 = vmatpush3.bf16.msra.mxu0 %v2193_v13  ;;  %2224 = vmatprep.subr.bf16.mxu1 %v2709_v11  ;;  %v2228_v41 = vpack.c.bf16 %v445_v39, %v444_v38  ;;  %v447_v43 = vld [vmem:[%s3003_s5 + $0x38] sm:$0xff]  ;;  %v425_v44 = vld [vmem:[%s2996_s13 + $0x8] sm:$0xff]  ;;  %v426_v45 = vld [vmem:[%s2996_s13 + $0x10] sm:$0xff] }
  0xa4   : > { %2198 = vmatprep.subr.bf16.mxu0 %v2197_v16  ;;  %v2231_v46 = vpack.c.bf16 %v447_v43, %v446_v42  ;;  %v427_v47 = vld [vmem:[%s2996_s13 + $0x18] sm:$0xff]  ;;  %v428_v48 = vld [vmem:[%s2996_s13 + $0x20] sm:$0xff]  ;;  %v449_v50 = vld [vmem:[%s3003_s5 + $0x48] sm:$0xff]  ;;  %v690_v30 = vsub.s32 0, %v689_v29 }
  0xa5   : > { %v448_v49 = vld [vmem:[%s3003_s5 + $0x40] sm:$0xff]  ;;  %v429_v51 = vld [vmem:[%s2996_s13 + $0x28] sm:$0xff]  ;;  %v430_v52 = vld [vmem:[%s2996_s13 + $0x30] sm:$0xff] }
  0xa6   : > { %v2234_v53 = vpack.c.bf16 %v449_v50, %v448_v49  ;;  %v431_v54 = vld [vmem:[%s2996_s13 + $0x38] sm:$0xff]  ;;  %v432_v55 = vld [vmem:[%s2996_s13 + $0x40] sm:$0xff]  ;;  %v450_v56 = vld [vmem:[%s3003_s5 + $0x50] sm:$0xff] }
  0xa7   : > { %2200 = vmatpush3.bf16.msra.mxu0 %v2197_v16  ;;  %v451_v57 = vld [vmem:[%s3003_s5 + $0x58] sm:$0xff]  ;;  %v433_v58 = vld [vmem:[%s2996_s13 + $0x48] sm:$0xff]  ;;  %v434_v59 = vld [vmem:[%s2996_s13 + $0x50] sm:$0xff] }
  0xa8   : > { %2202 = vmatprep.subr.bf16.mxu0 %v2201_v20  ;;  %v2237_v60 = vpack.c.bf16 %v451_v57, %v450_v56  ;;  %v435_v61 = vld [vmem:[%s2996_s13 + $0x58] sm:$0xff]  ;;  %v452_v62 = vld [vmem:[%s3003_s5 + $0x60] sm:$0xff]  ;;  %v453_v63 = vld [vmem:[%s3003_s5 + $0x68] sm:$0xff] }
  0xa9   : > { %v436_v0 = vld [vmem:[%s2996_s13 + $0x60] sm:$0xff]  ;;  %v2240_v1 = vpack.c.bf16 %v453_v63, %v452_v62  ;;  %v437_v2 = vld [vmem:[%s2996_s13 + $0x68] sm:$0xff]  ;;  %v454_v3 = vld [vmem:[%s3003_s5 + $0x70] sm:$0xff] }
  0xaa   : > { %2226 = vmatpush3.bf16.xpose.msra.mxu1 %v2225_v34  ;;  %v455_v4 = vld [vmem:[%s3003_s5 + $0x78] sm:$0xff]  ;;  %v438_v5 = vld [vmem:[%s2996_s13 + $0x70] sm:$0xff]  ;;  %v617_v8 = vld [vmem:[%s3835_s17] sm:$0x1] }
  0xab   : > { %2204 = vmatpush3.bf16.msra.mxu0 %v2201_v20  ;;  %2227 = vmatprep.subr.bf16.mxu1 %v2709_v11  ;;  %v2243_v6 = vpack.c.bf16 %v455_v4, %v454_v3  ;;  %v439_v7 = vld [vmem:[%s2996_s13 + $0x78] sm:$0xff]  ;;  %v837_v43 = vld [vmem:[%s3010_s10 + $0x8] sm:$0xff] }
  0xac   : > { %2206 = vmatprep.subr.bf16.mxu0 %v2205_v26  ;;  %v846_v3 = vunpack.c.2.s8 %v837_v43 }
  0xae   : > { %vm3201_vm15 = vcmp.gt.s32.totalorder %v846_v3, 0 }
  0xaf   : > { %2208 = vmatpush3.bf16.msra.mxu0 %v2205_v26 }
  0xb0   : > { %2210 = vmatprep.subr.bf16.mxu0 %v2209_v31 }
  0xb2   : > { %2229 = vmatpush3.bf16.xpose.msra.mxu1 %v2228_v41 }
  0xb3   : > { %2212 = vmatpush3.bf16.msra.mxu0 %v2209_v31  ;;  %2230 = vmatprep.subr.bf16.mxu1 %v2709_v11  ;;  %v836_v31 = vld [vmem:[%s3010_s10] sm:$0xff] }
  0xb4   : > { %2214 = vmatprep.subr.bf16.mxu0 %v2213_v35  ;;  %v840_v33 = vunpack.c.0.s8 %v836_v31  ;;  %v843_v36 = vunpack.c.3.s8 %v836_v31  ;;  %v842_v49 = vunpack.c.2.s8 %v836_v31 }
  0xb6   : > { %vm3142_vm3 = vcmp.gt.s32.totalorder %v840_v33, 0  ;;  %vm3149_vm4 = vcmp.gt.s32.totalorder %v843_v36, 0  ;;  %vm3172_vm9 = vcmp.gt.s32.totalorder %v842_v49, 0 }
  0xb7   : > { %2216 = vmatpush3.bf16.msra.mxu0 %v2213_v35 }
  0xb8   : > { %2218 = vmatprep.subr.bf16.mxu0 %v2217_v40 }
  0xba   : > { %2232 = vmatpush3.bf16.xpose.msra.mxu1 %v2231_v46 }
  0xbb   : > { %2220 = vmatpush3.bf16.msra.mxu0 %v2217_v40  ;;  %2233 = vmatprep.subr.bf16.mxu1 %v2709_v11  ;;  %v841_v40 = vunpack.c.1.s8 %v836_v31 }
  0xbc   : > { %2157 = vmatprep.subr.bf16.mxu0 %v2222_v25 }
  0xbd   : > { %vm3158_vm7 = vcmp.gt.s32.totalorder %v841_v40, 0 }
  0xbe   : > { %2099 = vmatmul.mubr.f32.vlgmr.msra.gmra.mrb[0].mxu0 %v425_v44 }
  0xbf   : > { %2101 = vmatprep.mubr.f32.mxu0 %v426_v45  ;;  %2158 = vmatpush3.bf16.msra.mxu0 %v2222_v25 }
  0xc0   : > { %2159 = vmatprep.subr.bf16.mxu0 %v2225_v34 }
  0xc2   : > { %2102 = vmatmul.mubr.f32.gmra.mrb[2].mxu0 %v427_v47  ;;  %2235 = vmatpush3.bf16.xpose.msra.mxu1 %v2234_v53 }
  0xc3   : > { %2104 = vmatprep.mubr.f32.mxu0 %v428_v48  ;;  %2160 = vmatpush3.bf16.msra.mxu0 %v2225_v34 }
  0xc4   : > { %2161 = vmatprep.subr.bf16.mxu0 %v2228_v41  ;;  %2236 = vmatprep.subr.bf16.mxu1 %v2709_v11 }
  0xc6   : > { %2105 = vmatmul.mubr.f32.gmra.mrb[4].mxu0 %v429_v51 }
  0xc7   : > { %2107 = vmatprep.mubr.f32.mxu0 %v430_v52  ;;  %2162 = vmatpush3.bf16.msra.mxu0 %v2228_v41 }
  0xc8   : > { %2163 = vmatprep.subr.bf16.mxu0 %v2231_v46 }
  0xca   : > { %2108 = vmatmul.mubr.f32.gmra.mrb[6].mxu0 %v431_v54  ;;  %2238 = vmatpush3.bf16.xpose.msra.mxu1 %v2237_v60 }
  0xcb   : > { %2110 = vmatprep.mubr.f32.mxu0 %v432_v55  ;;  %2164 = vmatpush3.bf16.msra.mxu0 %v2231_v46 }
  0xcc   : > { %2165 = vmatprep.subr.bf16.mxu0 %v2234_v53  ;;  %2239 = vmatprep.subr.bf16.mxu1 %v2709_v11 }
  0xce   : > { %2111 = vmatmul.mubr.f32.gmra.mrb[8].mxu0 %v433_v58 }
  0xcf   : > { %2113 = vmatprep.mubr.f32.mxu0 %v434_v59  ;;  %2166 = vmatpush3.bf16.msra.mxu0 %v2234_v53  ;;  %v844_v53 = vunpack.c.0.s8 %v837_v43 }
  0xd0   : > { %2167 = vmatprep.subr.bf16.mxu0 %v2237_v60 }
  0xd1   : > { %vm3178_vm11 = vcmp.gt.s32.totalorder %v844_v53, 0 }
  0xd2   : > { %2114 = vmatmul.mubr.f32.gmra.mrb[10].mxu0 %v435_v61  ;;  %2241 = vmatpush3.bf16.xpose.msra.mxu1 %v2240_v1 }
  0xd3   : > { %2116 = vmatprep.mubr.f32.mxu0 %v436_v0  ;;  %2168 = vmatpush3.bf16.msra.mxu0 %v2237_v60  ;;  %v845_v60 = vunpack.c.1.s8 %v837_v43 }
  0xd4   : > { %2169 = vmatprep.subr.bf16.mxu0 %v2240_v1  ;;  %2242 = vmatprep.subr.bf16.mxu1 %v2709_v11 }
  0xd5   : > { %vm3191_vm12 = vcmp.gt.s32.totalorder %v845_v60, 0 }
  0xd6   : > { %2117 = vmatmul.mubr.f32.gmra.mrb[12].mxu0 %v437_v2 }
  0xd7   : > { %2119 = vmatprep.mubr.f32.mxu0 %v438_v5  ;;  %2170 = vmatpush3.bf16.msra.mxu0 %v2240_v1 }
  0xd8   : > { %2171 = vmatprep.subr.bf16.mxu0 %v2243_v6 }
  0xda   : > { %2120 = vmatmul.mubr.f32.gmra.mrb[14].mxu0 %v439_v7  ;;  %2244 = vmatpush3.bf16.xpose.msra.mxu1 %v2243_v6  ;;  %v3184_v7 = vld [vmem:[%s3010_s10 + $0x10] sm:$0xff] }
  0xdb   : > { %2172 = vmatpush3.bf16.msra.mxu0 %v2243_v6  ;;  %v850_v33 = vunpack.c.2.s8 %v3184_v7 }
  0xe1   : > { %2155 = vmatmul.mubr.f32.vlgmr.msra.gmra.mrb[0].mxu1 %v617_v8 }
 0x191   : > { %v2100_v10 = vpop.f32.mrb[0].mxu0 }
 0x192   : > { %v538_v12 = vpop.f32.mrb[1].mxu0 }
 0x193   : > { %694 = vperm.xlu0 %2371, %v538_v12  }
 0x195   : > { %v2103_v13 = vpop.f32.mrb[2].mxu0 }
 0x196   : > { %709 = vperm.xlu1 %2372, %v2103_v13   ;;  %v548_v14 = vpop.f32.mrb[3].mxu0 }
 0x197   : > { %699 = vperm.xlu0 %2371, %v2100_v10  }
 0x199   : > { %v2106_v15 = vpop.f32.mrb[4].mxu0 }
 0x19a   : > { %704 = vperm.xlu1 %2372, %v548_v14   ;;  %v558_v11 = vpop.f32.mrb[5].mxu0 }
 0x19b   : > { %714 = vperm.xlu0 %2371, %v558_v11  }
 0x19d   : > { %v2109_v16 = vpop.f32.mrb[6].mxu0 }
 0x19e   : > { %719 = vperm.xlu1 %2372, %v2106_v15   ;;  %v568_v17 = vpop.f32.mrb[7].mxu0  ;;  %v847_v15 = vunpack.c.3.s8 %v837_v43 }
 0x19f   : > { %724 = vperm.xlu0 %2371, %v568_v17  }
 0x1a0   : > { %vm3217_vm1 = vcmp.gt.s32.totalorder %v847_v15, 0 }
 0x1a1   : > { %v2112_v18 = vpop.f32.mrb[8].mxu0 }
 0x1a2   : > { %729 = vperm.xlu1 %2372, %v2109_v16   ;;  %v578_v19 = vpop.f32.mrb[9].mxu0 }
 0x1a3   : > { %734 = vperm.xlu0 %2371, %v578_v19  }
 0x1a5   : > { %v2115_v20 = vpop.f32.mrb[10].mxu0 }
 0x1a6   : > { %739 = vperm.xlu1 %2372, %v2112_v18   ;;  %v588_v21 = vpop.f32.mrb[11].mxu0  ;;  %v848_v18 = vunpack.c.0.s8 %v3184_v7 }
 0x1a7   : > { %744 = vperm.xlu0 %2371, %v588_v21  }
 0x1a9   : > { %v2118_v22 = vpop.f32.mrb[12].mxu0 }
 0x1aa   : > { %749 = vperm.xlu1 %2372, %v2115_v20   ;;  %v598_v23 = vpop.f32.mrb[13].mxu0 }
 0x1ab   : > { %754 = vperm.xlu0 %2371, %v598_v23  }
 0x1ad   : > { %v2121_v24 = vpop.f32.mrb[14].mxu0 }
 0x1ae   : > { %759 = vperm.xlu1 %2372, %v2118_v22   ;;  %v608_v25 = vpop.f32.mrb[15].mxu0 }
 0x1af   : > { %764 = vperm.xlu0 %2371, %v608_v25   ;;  %v849_v25 = vunpack.c.1.s8 %v3184_v7 }
 0x1b2   : > { %769 = vperm.xlu1 %2372, %v2121_v24  }
 0x1b4   : > { %v684_v26 = vpop.f32.mrb[0].mxu1 }
 0x1b5   : > { %v2156_v27 = vpop.f32.mrb[1].mxu1  ;;  %v3139_v32 = vrot.slane %v684_v26, %v690_v30 }
 0x212   : > { %v695_v34 = vpop.permute.xlu0 %694 }
 0x213   : > { %v772_v35 = vadd.f32 %v695_v34, %v3139_v32 }
 0x215   : > { %v804_v37 = vmul.f32 0.01, %v772_v35  ;;  %v710_v38 = vpop.permute.xlu1 %709  ;;  %vm788_vm2 = vcmp.gt.f32.partialorder %v772_v35, 0.0 }
 0x216   : > { %v775_v41 = vadd.f32 %v710_v38, %v3139_v32  ;;  %v700_v42 = vpop.permute.xlu0 %699 }
 0x217   : > { %v773_v44 = vadd.f32 %v700_v42, %v3139_v32  ;;  %v820_v45 = vsel %vm788_vm2, %v772_v35, %v804_v37  ;;  %v839_v37 = vld [vmem:[%s3010_s10 + $0x18] sm:$0xff] }
 0x218   : > { %v807_v47 = vmul.f32 0.01, %v775_v41  ;;  %v3155_v48 = vsel %vm3142_vm3, %v820_v45, -1e+30  ;;  %vm791_vm5 = vcmp.gt.f32.partialorder %v775_v41, 0.0  ;;  %v851_v45 = vunpack.c.3.s8 %v3184_v7 }
 0x219   : > { %v805_v50 = vmul.f32 0.01, %v773_v44  ;;  %v705_v51 = vpop.permute.xlu1 %704  ;;  %904 = vmax.xlane.f32.xlu0 %v3155_v48  ;;  %vm789_vm6 = vcmp.gt.f32.partialorder %v773_v44, 0.0  ;;  %v853_v60 = vunpack.c.1.s8 %v839_v37 }
 0x21a   : > { %v774_v54 = vadd.f32 %v705_v51, %v3139_v32  ;;  %v715_v55 = vpop.permute.xlu0 %714  ;;  %v823_v56 = vsel %vm791_vm5, %v775_v41, %v807_v47  ;;  %vm3223_vm5 = vcmp.gt.s32.totalorder %v848_v18, 0  ;;  %v852_v51 = vunpack.c.0.s8 %v839_v37 }
 0x21b   : > { %v776_v57 = vadd.f32 %v715_v55, %v3139_v32  ;;  %v821_v58 = vsel %vm789_vm6, %v773_v44, %v805_v50  ;;  %v3166_v59 = vsel %vm3149_vm4, %v823_v56, -1e+30  ;;  %vm3235_vm6 = vcmp.gt.s32.totalorder %v849_v25, 0 }
 0x21c   : > { %v806_v61 = vmul.f32 0.01, %v774_v54  ;;  %v3170_v62 = vsel %vm3158_vm7, %v821_v58, -1e+30  ;;  %vm790_vm8 = vcmp.gt.f32.partialorder %v774_v54, 0.0  ;;  %v3856_v50 = vmov 0 }
 0x21d   : > { %v808_v0 = vmul.f32 0.01, %v776_v57  ;;  %v720_v1 = vpop.permute.xlu1 %719  ;;  %906 = vmax.xlane.f32.xlu1 %v3170_v62  ;;  %910 = vmax.xlane.f32.xlu0 %v3166_v59  ;;  %vm792_vm10 = vcmp.gt.f32.partialorder %v776_v57, 0.0 }
 0x21e   : > { %v777_v4 = vadd.f32 %v720_v1, %v3139_v32  ;;  %v725_v5 = vpop.permute.xlu0 %724  ;;  %v822_v6 = vsel %vm790_vm8, %v774_v54, %v806_v61  ;;  %v3858_v1 = vmov 0 }
 0x21f   : > { %v778_v8 = vadd.f32 %v725_v5, %v3139_v32  ;;  %v824_v9 = vsel %vm792_vm10, %v776_v57, %v808_v0  ;;  %v3189_v10 = vsel %vm3172_vm9, %v822_v6, -1e+30  ;;  %v3860_v5 = vmov 0 }
 0x220   : > { %v809_v13 = vmul.f32 0.01, %v777_v4  ;;  %v3197_v14 = vsel %vm3178_vm11, %v824_v9, -1e+30  ;;  %vm793_vm13 = vcmp.gt.f32.partialorder %v777_v4, 0.0  ;;  %v854_v6 = vunpack.c.2.s8 %v839_v37 }
 0x221   : > { %v810_v11 = vmul.f32 0.01, %v778_v8  ;;  %v730_v16 = vpop.permute.xlu1 %729  ;;  %912 = vmax.xlane.f32.xlu1 %v3197_v14  ;;  %908 = vmax.xlane.f32.xlu0 %v3189_v10  ;;  %vm794_vm14 = vcmp.gt.f32.partialorder %v778_v8, 0.0 }
 0x222   : > { %v779_v19 = vadd.f32 %v730_v16, %v3139_v32  ;;  %v735_v20 = vpop.permute.xlu0 %734  ;;  %v825_v21 = vsel %vm793_vm13, %v777_v4, %v809_v13  ;;  %vm3246_vm13 = vcmp.gt.s32.totalorder %v850_v33, 0 }
 0x223   : > { %v780_v22 = vadd.f32 %v735_v20, %v3139_v32  ;;  %v826_v23 = vsel %vm794_vm14, %v778_v8, %v810_v11  ;;  %v3210_v24 = vsel %vm3191_vm12, %v825_v21, -1e+30  ;;  %v3857_v50 = vsel %vm3246_vm13, 4294967295, %v3856_v50 }
 0x224   : > { %v811_v26 = vmul.f32 0.01, %v779_v19  ;;  %v3215_v27 = vsel %vm3201_vm15, %v826_v23, -1e+30  ;;  %vm795_vm0 = vcmp.gt.f32.partialorder %v779_v19, 0.0  ;;  %v855_v20 = vunpack.c.3.s8 %v839_v37  ;;  %v888_v37 = vld [vmem:[#allocation2] sm:$0xff] }
 0x225   : > { %v812_v29 = vmul.f32 0.01, %v780_v22  ;;  %v740_v30 = vpop.permute.xlu1 %739  ;;  %916 = vmax.xlane.f32.xlu1 %v3215_v27  ;;  %914 = vmax.xlane.f32.xlu0 %v3210_v24  ;;  %vm796_vm2 = vcmp.gt.f32.partialorder %v780_v22, 0.0 }
 0x226   : > { %v781_v34 = vadd.f32 %v740_v30, %v3139_v32  ;;  %v745_v35 = vpop.permute.xlu0 %744  ;;  %v827_v36 = vsel %vm795_vm0, %v779_v19, %v811_v26  ;;  %vm3260_vm0 = vcmp.gt.s32.totalorder %v851_v45, 0  ;;  %v3310_v45 = vld [vmem:[#allocation2 + $0x18] sm:$0xff] }
 0x227   : > { %v782_v38 = vadd.f32 %v745_v35, %v3139_v32  ;;  %v828_v40 = vsel %vm796_vm2, %v780_v22, %v812_v29  ;;  %v3233_v41 = vsel %vm3217_vm1, %v827_v36, -1e+30  ;;  %v3859_v1 = vsel %vm3260_vm0, 4294967295, %v3858_v1 }
 0x228   : > { %v813_v43 = vmul.f32 0.01, %v781_v34  ;;  %v3241_v44 = vsel %vm3223_vm5, %v828_v40, -1e+30  ;;  %vm797_vm8 = vcmp.gt.f32.partialorder %v781_v34, 0.0 }
 0x229   : > { %v814_v47 = vmul.f32 0.01, %v782_v38  ;;  %v750_v49 = vpop.permute.xlu1 %749  ;;  %920 = vmax.xlane.f32.xlu1 %v3241_v44  ;;  %918 = vmax.xlane.f32.xlu0 %v3233_v41  ;;  %vm798_vm10 = vcmp.gt.f32.partialorder %v782_v38, 0.0 }
 0x22a   : > { %v783_v53 = vadd.f32 %v750_v49, %v3139_v32  ;;  %v755_v54 = vpop.permute.xlu0 %754  ;;  %v829_v55 = vsel %vm797_vm8, %v781_v34, %v813_v43  ;;  %vm3266_vm8 = vcmp.gt.s32.totalorder %v852_v51, 0  ;;  %v889_v43 = vld [vmem:[#allocation2 + $0x8] sm:$0xff] }
 0x22b   : > { %v784_v56 = vadd.f32 %v755_v54, %v3139_v32  ;;  %v830_v57 = vsel %vm798_vm10, %v782_v38, %v814_v47  ;;  %v3254_v58 = vsel %vm3235_vm6, %v829_v55, -1e+30  ;;  %v3861_v5 = vsel %vm3266_vm8, 4294967295, %v3860_v5  ;;  %v892_v54 = vld [vmem:[#allocation2 + $0x20] sm:$0xff]  ;;  %v890_v55 = vld [vmem:[#allocation2 + $0x10] sm:$0xff] }
 0x22c   : > { %v815_v61 = vmul.f32 0.01, %v783_v53  ;;  %v3258_v0 = vsel %vm3246_vm13, %v830_v57, -1e+30  ;;  %vm799_vm14 = vcmp.gt.f32.partialorder %v783_v53, 0.0  ;;  %vm3276_vm10 = vcmp.gt.s32.totalorder %v853_v60, 0 }
 0x22d   : > { %v816_v3 = vmul.f32 0.01, %v784_v56  ;;  %v760_v4 = vpop.permute.xlu1 %759  ;;  %924 = vmax.xlane.f32.xlu1 %v3258_v0  ;;  %922 = vmax.xlane.f32.xlu0 %v3254_v58  ;;  %vm800_vm2 = vcmp.gt.f32.partialorder %v784_v56, 0.0 }
 0x22e   : > { %v785_v7 = vadd.f32 %v760_v4, %v3139_v32  ;;  %v765_v8 = vpop.permute.xlu0 %764  ;;  %v831_v9 = vsel %vm799_vm14, %v783_v53, %v815_v61  ;;  %v3320_v4 = vld [vmem:[#allocation2 + $0x28] sm:$0xff] }
 0x22f   : > { %v786_v13 = vadd.f32 %v765_v8, %v3139_v32  ;;  %v832_v15 = vsel %vm800_vm2, %v784_v56, %v816_v3  ;;  %v3274_v11 = vsel %vm3260_vm0, %v831_v9, -1e+30  ;;  %vm3286_vm2 = vcmp.gt.s32.totalorder %v854_v6, 0  ;;  %v894_v3 = vld [vmem:[#allocation2 + $0x30] sm:$0xff] }
 0x230   : > { %v817_v18 = vmul.f32 0.01, %v785_v7  ;;  %v3282_v19 = vsel %vm3266_vm8, %v832_v15, -1e+30  ;;  %vm801_vm13 = vcmp.gt.f32.partialorder %v785_v7, 0.0  ;;  %vm3299_vm0 = vcmp.gt.s32.totalorder %v855_v20, 0 }
 0x231   : > { %v818_v21 = vmul.f32 0.01, %v786_v13  ;;  %928 = vmax.xlane.f32.xlu1 %v3282_v19  ;;  %v770_v22 = vpop.permute.xlu1 %769  ;;  %926 = vmax.xlane.f32.xlu0 %v3274_v11  ;;  %vm802_vm14 = vcmp.gt.f32.partialorder %v786_v13, 0.0  ;;  %v3329_v15 = vld [vmem:[#allocation2 + $0x38] sm:$0xff] }
 0x232   : > { %v787_v25 = vadd.f32 %v770_v22, %v3139_v32  ;;  %v833_v26 = vsel %vm801_vm13, %v785_v7, %v817_v18  ;;  %vm1224_vm13 = vcmask 7168  }
 0x233   : > { %v3293_v29 = vsel %vm3276_vm10, %v833_v26, -1e+30  ;;  %v834_v30 = vsel %vm802_vm14, %v786_v13, %v818_v21  ;;  %v3327_v13 = vld [vmem:[#allocation2 + $0x40] sm:$0xff]  ;;  %v3339_v26 = vld [vmem:[#allocation2 + $0x50] sm:$0xff]  ;;  %vm1954_vm14 = vmpackc.low %vm3149_vm4, %vm3172_vm9 }
 0x234   : > { %v819_v33 = vmul.f32 0.01, %v787_v25  ;;  %v3297_v34 = vsel %vm3286_vm2, %v834_v30, -1e+30  ;;  %vm803_vm8 = vcmp.gt.f32.partialorder %v787_v25, 0.0  ;;  %v3341_v30 = vld [vmem:[#allocation2 + $0x48] sm:$0xff] }
 0x235   : > { %930 = vmax.xlane.f32.xlu0 %v3293_v29  ;;  %932 = vmax.xlane.f32.xlu1 %v3297_v34 }
 0x236   : > { %v835_v32 = vsel %vm803_vm8, %v787_v25, %v819_v33  ;;  %vm1951_vm8 = vmpackc.low %vm3158_vm7, %vm3142_vm3 }
 0x237   : > { %v3307_v36 = vsel %vm3299_vm0, %v835_v32, -1e+30 }
 0x239   : > { %934 = vmax.xlane.f32.xlu0 %v3307_v36 }
 0x2a6   : > { %v905_v38 = vpop.xlane.xlu0 %904 }
 0x2a7   : > { %v936_v40 = vmax.f32 %v888_v37, %v905_v38 }
 0x2a9   : > { %1498 = vst.msk [vmem:[#allocation2] sm:$0xff] %vm1224_vm13, %v936_v40  ;;  %1002 = vperm.xlu1 %2372, %v936_v40   ;;  %v952_v33 = vsub.f32 %v888_v37, %v936_v40  ;;  %v3353_v37 = vld [vmem:[#allocation2 + $0x58] sm:$0xff] }
 0x2aa   : > { %v907_v47 = vpop.xlane.xlu1 %906  ;;  %v911_v49 = vpop.xlane.xlu0 %910 }
 0x2ab   : > { %v937_v51 = vmax.f32 %v889_v43, %v907_v47  ;;  %v3314_v53 = vmax.f32 %v3310_v45, %v911_v49  ;;  %v968_v40 = vmul.f32 1.442695, %v952_v33 }
 0x2ad   : > { %1499 = vst.msk [vmem:[#allocation2 + $0x8] sm:$0xff] %vm1224_vm13, %v937_v51  ;;  %1501 = vst.msk [vmem:[#allocation2 + $0x18] sm:$0xff] %vm1224_vm13, %v3314_v53  ;;  %1007 = vperm.xlu0 %2371, %v937_v51   ;;  %1017 = vperm.xlu1 %2372, %v3314_v53   ;;  %v953_v18 = vsub.f32 %v889_v43, %v937_v51 }
 0x2ae   : > { %v913_v56 = vpop.xlane.xlu1 %912  ;;  %v909_v57 = vpop.xlane.xlu0 %908 }
 0x2af   : > { %v940_v60 = vmax.f32 %v892_v54, %v913_v56  ;;  %v938_v61 = vmax.f32 %v890_v55, %v909_v57  ;;  %v970_v32 = vmul.f32 1.442695, %v953_v18  ;;  %v3351_v56 = vld [vmem:[#allocation2 + $0x60] sm:$0xff] }
 0x2b1   : > { %1502 = vst.msk [vmem:[#allocation2 + $0x20] sm:$0xff] %vm1224_vm13, %v940_v60  ;;  %1500 = vst.msk [vmem:[#allocation2 + $0x10] sm:$0xff] %vm1224_vm13, %v938_v61  ;;  %1022 = vperm.xlu0 %2371, %v940_v60   ;;  %1012 = vperm.xlu1 %2372, %v938_v61   ;;  %v956_v38 = vsub.f32 %v892_v54, %v940_v60  ;;  %v954_v57 = vsub.f32 %v890_v55, %v938_v61  ;;  %2373 = vpow2.f32 %v970_v32  ;;  %v3365_v55 = vld [vmem:[#allocation2 + $0x68] sm:$0xff] }
 0x2b2   : > { %v917_v6 = vpop.xlane.xlu1 %916  ;;  %v915_v7 = vpop.xlane.xlu0 %914  ;;  %2375 = vpow2.f32 %v968_v40  ;;  %v955_v61 = vsub.f32 %v3310_v45, %v3314_v53  ;;  %v3378_v53 = vld [vmem:[#allocation2 + $0x78] sm:$0xff] }
 0x2b3   : > { %v942_v8 = vmax.f32 %v894_v3, %v917_v6  ;;  %v3325_v9 = vmax.f32 %v3320_v4, %v915_v7  ;;  %v976_v54 = vmul.f32 1.442695, %v956_v38  ;;  %v972_v33 = vmul.f32 1.442695, %v954_v57 }
 0x2b5   : > { %1504 = vst.msk [vmem:[#allocation2 + $0x30] sm:$0xff] %vm1224_vm13, %v942_v8  ;;  %1503 = vst.msk [vmem:[#allocation2 + $0x28] sm:$0xff] %vm1224_vm13, %v3325_v9  ;;  %1032 = vperm.xlu0 %2371, %v942_v8   ;;  %1027 = vperm.xlu1 %2372, %v3325_v9   ;;  %v958_v60 = vsub.f32 %v894_v3, %v942_v8  ;;  %2377 = vpow2.f32 %v976_v54  ;;  %v957_v40 = vsub.f32 %v3320_v4, %v3325_v9 }
 0x2b6   : > { %v921_v20 = vpop.xlane.xlu1 %920  ;;  %v919_v21 = vpop.xlane.xlu0 %918  ;;  %2379 = vpow2.f32 %v972_v33 }
 0x2b7   : > { %v944_v22 = vmax.f32 %v3327_v13, %v921_v20  ;;  %v3337_v25 = vmax.f32 %v3329_v15, %v919_v21  ;;  %v3363_v21 = vld [vmem:[#allocation2 + $0x70] sm:$0xff]  ;;  %v980_v3 = vmul.f32 1.442695, %v958_v60  ;;  %v978_v9 = vmul.f32 1.442695, %v957_v40 }
 0x2b9   : > { %1506 = vst.msk [vmem:[#allocation2 + $0x40] sm:$0xff] %vm1224_vm13, %v944_v22  ;;  %1505 = vst.msk [vmem:[#allocation2 + $0x38] sm:$0xff] %vm1224_vm13, %v3337_v25  ;;  %1042 = vperm.xlu0 %2371, %v944_v22   ;;  %1037 = vperm.xlu1 %2372, %v3337_v25   ;;  %v960_v8 = vsub.f32 %v3327_v13, %v944_v22  ;;  %2381 = vpow2.f32 %v980_v3 }
 0x2ba   : > { %v925_v43 = vpop.xlane.xlu1 %924  ;;  %v923_v47 = vpop.xlane.xlu0 %922 }
 0x2bb   : > { %v946_v49 = vmax.f32 %v3339_v26, %v925_v43  ;;  %v3349_v51 = vmax.f32 %v3341_v30, %v923_v47  ;;  %v974_v47 = vmul.f32 1.442695, %v955_v61  ;;  %v984_v13 = vmul.f32 1.442695, %v960_v8  ;;  %v3392_v4 = vpop.eup %2373 }
 0x2bc   : > { %v3403_v61 = vpop.eup %2375 }
 0x2bd   : > { %1508 = vst.msk [vmem:[#allocation2 + $0x50] sm:$0xff] %vm1224_vm13, %v946_v49  ;;  %1507 = vst.msk [vmem:[#allocation2 + $0x48] sm:$0xff] %vm1224_vm13, %v3349_v51  ;;  %1052 = vperm.xlu0 %2371, %v946_v49   ;;  %1047 = vperm.xlu1 %2372, %v3349_v51   ;;  %v962_v22 = vsub.f32 %v3339_v26, %v946_v49  ;;  %2383 = vpow2.f32 %v974_v47 }
 0x2be   : > { %v929_v6 = vpop.xlane.xlu1 %928  ;;  %v927_v7 = vpop.xlane.xlu0 %926  ;;  %2385 = vpow2.f32 %v984_v13 }
 0x2bf   : > { %v948_v18 = vmax.f32 %v3351_v56, %v929_v6  ;;  %v3361_v20 = vmax.f32 %v3353_v37, %v927_v7  ;;  %v959_v6 = vsub.f32 %v3329_v15, %v3337_v25  ;;  %v988_v26 = vmul.f32 1.442695, %v962_v22  ;;  %v3405_v33 = vpop.eup %2377 }
 0x2c0   : > { %2387 = vpow2.f32 %v978_v9  ;;  %v961_v25 = vsub.f32 %v3341_v30, %v3349_v51  ;;  %v3411_v8 = vpop.eup %2379 }
 0x2c1   : > { %1510 = vst.msk [vmem:[#allocation2 + $0x60] sm:$0xff] %vm1224_vm13, %v948_v18  ;;  %1509 = vst.msk [vmem:[#allocation2 + $0x58] sm:$0xff] %vm1224_vm13, %v3361_v20  ;;  %1062 = vperm.xlu0 %2371, %v948_v18   ;;  %1057 = vperm.xlu1 %2372, %v3361_v20   ;;  %v964_v49 = vsub.f32 %v3351_v56, %v948_v18  ;;  %v982_v15 = vmul.f32 1.442695, %v959_v6  ;;  %2389 = vpow2.f32 %v988_v26 }
 0x2c2   : > { %v933_v32 = vpop.xlane.xlu1 %932  ;;  %v931_v38 = vpop.xlane.xlu0 %930  ;;  %v986_v56 = vmul.f32 1.442695, %v961_v25  ;;  %v963_v18 = vsub.f32 %v3353_v37, %v3361_v20 }
 0x2c3   : > { %v3375_v43 = vmax.f32 %v3363_v21, %v933_v32  ;;  %v949_v45 = vmax.f32 %v3365_v55, %v931_v38  ;;  %v992_v3 = vmul.f32 1.442695, %v964_v49  ;;  %v3413_v32 = vpop.eup %2381  ;;  %2391 = vpow2.f32 %v982_v15 }
 0x2c4   : > { %v990_v30 = vmul.f32 1.442695, %v963_v18 }
 0x2c5   : > { %1512 = vst.msk [vmem:[#allocation2 + $0x70] sm:$0xff] %vm1224_vm13, %v3375_v43  ;;  %1511 = vst.msk [vmem:[#allocation2 + $0x68] sm:$0xff] %vm1224_vm13, %v949_v45  ;;  %1072 = vperm.xlu0 %2371, %v3375_v43   ;;  %1067 = vperm.xlu1 %2372, %v949_v45   ;;  %2393 = vpow2.f32 %v992_v3  ;;  %v965_v51 = vsub.f32 %v3365_v55, %v949_v45 }
 0x2c6   : > { %v935_v54 = vpop.xlane.xlu0 %934  ;;  %2395 = vpow2.f32 %v986_v56 }
 0x2c7   : > { %v3390_v60 = vmax.f32 %v3378_v53, %v935_v54  ;;  %v3419_v38 = vpop.eup %2383  ;;  %2397 = vpow2.f32 %v990_v30  ;;  %v994_v37 = vmul.f32 1.442695, %v965_v51 }
 0x2c8   : > { %v3421_v47 = vpop.eup %2385 }
 0x2c9   : > { %1513 = vst.msk [vmem:[#allocation2 + $0x78] sm:$0xff] %vm1224_vm13, %v3390_v60  ;;  %1264 = vperm.xlu0 %2371, %v3392_v4   ;;  %1077 = vperm.xlu1 %2372, %v3390_v60   ;;  %2399 = vpow2.f32 %v994_v37 }
 0x2ca   : > { %v3426_v40 = vpop.eup %2387 }
 0x2cb   : > { %v3428_v13 = vpop.eup %2389 }
 0x2cd   : > { %1279 = vperm.xlu0 %2371, %v3405_v33   ;;  %1259 = vperm.xlu1 %2372, %v3403_v61   ;;  %v3432_v20 = vpop.eup %2391 }
 0x2cf   : > { %v3434_v22 = vpop.eup %2393 }
 0x2d0   : > { %v3438_v55 = vpop.eup %2395 }
 0x2d1   : > { %1289 = vperm.xlu0 %2371, %v3413_v32   ;;  %1269 = vperm.xlu1 %2372, %v3411_v8   ;;  %v3441_v45 = vpop.eup %2397 }
 0x2d3   : > { %v3444_v54 = vpop.eup %2399 }
 0x2d5   : > { %1299 = vperm.xlu0 %2371, %v3421_v47   ;;  %1274 = vperm.xlu1 %2372, %v3419_v38  }
 0x2d9   : > { %1309 = vperm.xlu0 %2371, %v3428_v13   ;;  %1284 = vperm.xlu1 %2372, %v3426_v40  }
 0x2dd   : > { %1319 = vperm.xlu0 %2371, %v3434_v22   ;;  %1294 = vperm.xlu1 %2372, %v3432_v20  }
 0x2e1   : > { %1304 = vperm.xlu1 %2372, %v3438_v55  }
 0x2e5   : > { %1314 = vperm.xlu1 %2372, %v3441_v45  }
 0x2e9   : > { %1324 = vperm.xlu1 %2372, %v3444_v54  }
 0x328   : > { %v1003_v9 = vpop.permute.xlu1 %1002 }
 0x329   : > { %v1080_v6 = vsub.f32 %v3155_v48, %v1003_v9 }
 0x32b   : > { %v1096_v26 = vmul.f32 1.442695, %v1080_v6 }
 0x32c   : > { %v1018_v49 = vpop.permute.xlu1 %1017  ;;  %v1008_v15 = vpop.permute.xlu0 %1007 }
 0x32d   : > { %2401 = vpow2.f32 %v1096_v26  ;;  %v1083_v25 = vsub.f32 %v3166_v59, %v1018_v49  ;;  %v1081_v3 = vsub.f32 %v3170_v62, %v1008_v15 }
 0x32f   : > { %v1102_v56 = vmul.f32 1.442695, %v1083_v25  ;;  %v1098_v18 = vmul.f32 1.442695, %v1081_v3 }
 0x330   : > { %v1013_v30 = vpop.permute.xlu1 %1012  ;;  %v1023_v51 = vpop.permute.xlu0 %1022 }
 0x331   : > { %2403 = vpow2.f32 %v1102_v56  ;;  %v1082_v37 = vsub.f32 %v3189_v10, %v1013_v30  ;;  %v1084_v57 = vsub.f32 %v3197_v14, %v1023_v51 }
 0x332   : > { %2405 = vpow2.f32 %v1098_v18 }
 0x333   : > { %v1100_v7 = vmul.f32 1.442695, %v1082_v37  ;;  %v1104_v48 = vmul.f32 1.442695, %v1084_v57 }
 0x334   : > { %v1028_v9 = vpop.permute.xlu1 %1027  ;;  %v1033_v6 = vpop.permute.xlu0 %1032 }
 0x335   : > { %2407 = vpow2.f32 %v1100_v7  ;;  %v1085_v26 = vsub.f32 %v3210_v24, %v1028_v9  ;;  %v1086_v59 = vsub.f32 %v3215_v27, %v1033_v6 }
 0x336   : > { %2409 = vpow2.f32 %v1104_v48 }
 0x337   : > { %v2402_v62 = vpop.eup %2401  ;;  %v1106_v49 = vmul.f32 1.442695, %v1085_v26  ;;  %v1108_v15 = vmul.f32 1.442695, %v1086_v59 }
 0x338   : > { %v1038_v25 = vpop.permute.xlu1 %1037  ;;  %v1043_v3 = vpop.permute.xlu0 %1042  ;;  %v1128_v10 = vsel %vm3142_vm3, %v2402_v62, 0.0  ;;  %vm1957_vm3 = vmpackc.low %vm3191_vm12, %vm3178_vm11 }
 0x339   : > { %2411 = vpow2.f32 %v1106_v49  ;;  %v1087_v14 = vsub.f32 %v3233_v41, %v1038_v25  ;;  %v1088_v57 = vsub.f32 %v3241_v44, %v1043_v3  ;;  %1176 = vadd.xlane.f32.xlu0 %v1128_v10 }
 0x33a   : > { %2413 = vpow2.f32 %v1108_v15 }
 0x33b   : > { %v2404_v7 = vpop.eup %2403  ;;  %v1110_v24 = vmul.f32 1.442695, %v1087_v14  ;;  %v1112_v56 = vmul.f32 1.442695, %v1088_v57 }
 0x33c   : > { %v2406_v27 = vpop.eup %2405  ;;  %v1048_v18 = vpop.permute.xlu1 %1047  ;;  %v1131_v51 = vsel %vm3149_vm4, %v2404_v7, 0.0  ;;  %vm1960_vm4 = vmpackc.low %vm3217_vm1, %vm3201_vm15 }
 0x33d   : > { %v1053_v30 = vpop.permute.xlu0 %1052  ;;  %2415 = vpow2.f32 %v1110_v24  ;;  %v1089_v37 = vsub.f32 %v3254_v58, %v1048_v18  ;;  %1182 = vadd.xlane.f32.xlu0 %v1131_v51  ;;  %v1129_v41 = vsel %vm3158_vm7, %v2406_v27, 0.0  ;;  %v1952_v44 = vpack.c.bf16 %v2406_v27, %v2402_v62  ;;  %vm1963_vm7 = vmpackc.low %vm3235_vm6, %vm3223_vm5 }
 0x33e   : > { %v1090_v48 = vsub.f32 %v3258_v0, %v1053_v30  ;;  %2417 = vpow2.f32 %v1112_v56  ;;  %1178 = vadd.xlane.f32.xlu1 %v1129_v41 }
 0x33f   : > { %v2408_v9 = vpop.eup %2407  ;;  %v1114_v58 = vmul.f32 1.442695, %v1089_v37  ;;  %2173 = vmatprep.mubr.msk.bf16.mxu0 %vm1951_vm8, %v1952_v44 }
 0x340   : > { %v1116_v0 = vmul.f32 1.442695, %v1090_v48  ;;  %v2410_v6 = vpop.eup %2409  ;;  %v1955_v26 = vpack.c.bf16 %v2404_v7, %v2408_v9  ;;  %v1058_v59 = vpop.permute.xlu1 %1057  ;;  %v1130_v39 = vsel %vm3172_vm9, %v2408_v9, 0.0  ;;  %vm3868_vm9 = vnez %v3857_v50 }
 0x341   : > { %v1063_v49 = vpop.permute.xlu0 %1062  ;;  %2419 = vpow2.f32 %v1114_v58  ;;  %v1091_v52 = vsub.f32 %v3274_v11, %v1058_v59  ;;  %1180 = vadd.xlane.f32.xlu0 %v1130_v39  ;;  %v1132_v15 = vsel %vm3178_vm11, %v2410_v6, 0.0  ;;  %vm3869_vm11 = vnez %v3859_v1 }
 0x342   : > { %v1092_v62 = vsub.f32 %v3282_v19, %v1063_v49  ;;  %2421 = vpow2.f32 %v1116_v0  ;;  %1184 = vadd.xlane.f32.xlu1 %v1132_v15  ;;  %2174 = vmatmul.mubr.msk.bf16.vlgmr.msra.gmra.mrb[16].mxu0 %vm1954_vm14, %v1955_v26 }
 0x343   : > { %v2412_v25 = vpop.eup %2411  ;;  %v1118_v3 = vmul.f32 1.442695, %v1091_v52  ;;  %v3872_v52 = vsub.f32 %v3363_v21, %v3375_v43 }
 0x344   : > { %v1120_v10 = vmul.f32 1.442695, %v1092_v62  ;;  %v2414_v11 = vpop.eup %2413  ;;  %v1068_v19 = vpop.permute.xlu1 %1067  ;;  %v1133_v57 = vsel %vm3191_vm12, %v2412_v25, 0.0  ;;  %v1958_v7 = vpack.c.bf16 %v2412_v25, %v2410_v6  ;;  %vm1966_vm12 = vmpackc.low %vm3869_vm11, %vm3868_vm9 }
 0x345   : > { %v1073_v14 = vpop.permute.xlu0 %1072  ;;  %2423 = vpow2.f32 %v1118_v3  ;;  %v1093_v46 = vsub.f32 %v3293_v29, %v1068_v19  ;;  %1186 = vadd.xlane.f32.xlu0 %v1133_v57  ;;  %v1134_v24 = vsel %vm3201_vm15, %v2414_v11, 0.0  ;;  %vm3870_vm15 = vnez %v3861_v5 }
 0x346   : > { %v1094_v63 = vsub.f32 %v3297_v34, %v1073_v14  ;;  %2425 = vpow2.f32 %v1120_v10  ;;  %1188 = vadd.xlane.f32.xlu1 %v1134_v24  ;;  %2177 = vmatprep.mubr.msk.bf16.mxu0 %vm1957_vm3, %v1958_v7  ;;  %v3871_v5 = vsub.f32 %v3378_v53, %v3390_v60  ;;  %v996_v62 = vmul.f32 1.442695, %v3872_v52 }
 0x347   : > { %v2416_v2 = vpop.eup %2415  ;;  %v1122_v56 = vmul.f32 1.442695, %v1093_v46  ;;  %v1144_v46 = vld [vmem:[#allocation3] sm:$0xff] }
 0x348   : > { %v1124_v27 = vmul.f32 1.442695, %v1094_v63  ;;  %v2418_v12 = vpop.eup %2417  ;;  %v1078_v18 = vpop.permute.xlu1 %1077  ;;  %v1135_v29 = vsel %vm3217_vm1, %v2416_v2, 0.0  ;;  %v1961_v34 = vpack.c.bf16 %v2416_v2, %v2414_v11  ;;  %vm1969_vm1 = vmpackc.low %vm3276_vm10, %vm3870_vm15  ;;  %v998_v49 = vmul.f32 1.442695, %v3871_v5  ;;  %v1147_v2 = vld [vmem:[#allocation3 + $0x18] sm:$0xff] }
 0x349   : > { %2427 = vpow2.f32 %v1122_v56  ;;  %v1095_v30 = vsub.f32 %v3307_v36, %v1078_v18  ;;  %1190 = vadd.xlane.f32.xlu0 %v1135_v29  ;;  %v1136_v51 = vsel %vm3223_vm5, %v2418_v12, 0.0  ;;  %vm1972_vm5 = vmpackc.low %vm3299_vm0, %vm3286_vm2  ;;  %v3548_v60 = vpop.permute.xlu0 %1264  ;;  %v1160_v63 = vmul.f32 %v3403_v61, %v1144_v46 }
 0x34a   : > { %2429 = vpow2.f32 %v1124_v27  ;;  %1192 = vadd.xlane.f32.xlu1 %v1136_v51  ;;  %2178 = vmatmul.mubr.msk.bf16.gmra.mrb[20].mxu0 %vm1960_vm4, %v1961_v34  ;;  %v1163_v18 = vmul.f32 %v3419_v38, %v1147_v2 }
 0x34b   : > { %v2420_v17 = vpop.eup %2419  ;;  %v1126_v37 = vmul.f32 1.442695, %v1095_v30  ;;  %v1146_v30 = vld [vmem:[#allocation3 + $0x10] sm:$0xff] }
 0x34c   : > { %v2422_v28 = vpop.eup %2421  ;;  %v1137_v48 = vsel %vm3235_vm6, %v2420_v17, 0.0  ;;  %v1964_v41 = vpack.c.bf16 %v2420_v17, %v2418_v12  ;;  %v3544_v53 = vpop.permute.xlu1 %1259  ;;  %v1145_v12 = vld [vmem:[#allocation3 + $0x8] sm:$0xff]  ;;  %v1162_v61 = vmul.f32 %v3411_v8, %v1146_v30  ;;  %v1151_v8 = vld [vmem:[#allocation3 + $0x38] sm:$0xff] }
 0x34d   : > { %2431 = vpow2.f32 %v1126_v37  ;;  %1194 = vadd.xlane.f32.xlu0 %v1137_v48  ;;  %v1138_v36 = vsel %vm3868_vm9, %v2422_v28, 0.0  ;;  %v3552_v3 = vpop.permute.xlu0 %1279  ;;  %v1161_v29 = vmul.f32 %v3392_v4, %v1145_v12  ;;  %v1148_v37 = vld [vmem:[#allocation3 + $0x20] sm:$0xff] }
 0x34e   : > { %1196 = vadd.xlane.f32.xlu1 %v1138_v36  ;;  %2181 = vmatprep.mubr.msk.bf16.mxu0 %vm1963_vm7, %v1964_v41  ;;  %2433 = vpow2.f32 %v998_v49  ;;  %v1164_v48 = vmul.f32 %v3405_v33, %v1148_v37  ;;  %v1149_v36 = vld [vmem:[#allocation3 + $0x28] sm:$0xff] }
 0x34f   : > { %v2424_v44 = vpop.eup %2423  ;;  %2435 = vpow2.f32 %v996_v62 }
 0x350   : > { %v2426_v31 = vpop.eup %2425  ;;  %v1139_v9 = vsel %vm3869_vm11, %v2424_v44, 0.0  ;;  %v1967_v42 = vpack.c.bf16 %v2424_v44, %v2422_v28  ;;  %v3546_v35 = vpop.permute.xlu1 %1269 }
 0x351   : > { %1198 = vadd.xlane.f32.xlu0 %v1139_v9  ;;  %v1140_v58 = vsel %vm3870_vm15, %v2426_v31, 0.0  ;;  %v3556_v43 = vpop.permute.xlu0 %1289  ;;  %v1165_v9 = vmul.f32 %v3426_v40, %v1149_v36  ;;  %v1153_v40 = vld [vmem:[#allocation3 + $0x48] sm:$0xff]  ;;  %v1241_v36 = vld [vmem:[#allocation4] sm:$0xff] }
 0x352   : > { %1200 = vadd.xlane.f32.xlu1 %v1140_v58  ;;  %2182 = vmatmul.mubr.msk.bf16.gmra.mrb[24].mxu0 %vm1966_vm12, %v1967_v42 }
 0x353   : > { %v2428_v0 = vpop.eup %2427 }
 0x354   : > { %v2430_v50 = vpop.eup %2429  ;;  %v1141_v6 = vsel %vm3276_vm10, %v2428_v0, 0.0  ;;  %v1970_v26 = vpack.c.bf16 %v2428_v0, %v2426_v31  ;;  %v3550_v25 = vpop.permute.xlu1 %1274  ;;  %v1150_v31 = vld [vmem:[#allocation3 + $0x30] sm:$0xff] }
 0x355   : > { %1202 = vadd.xlane.f32.xlu0 %v1141_v6  ;;  %v1142_v1 = vsel %vm3286_vm2, %v2430_v50, 0.0  ;;  %v3560_v11 = vpop.permute.xlu0 %1299  ;;  %v1166_v42 = vmul.f32 %v3413_v32, %v1150_v31  ;;  %v1152_v6 = vld [vmem:[#allocation3 + $0x40] sm:$0xff]  ;;  %v1337_v31 = vmul.f32 %v3544_v53, %v1241_v36 }
 0x356   : > { %1204 = vadd.xlane.f32.xlu1 %v1142_v1  ;;  %2185 = vmatprep.mubr.msk.bf16.mxu0 %vm1969_vm1, %v1970_v26  ;;  %v1167_v26 = vmul.f32 %v3432_v20, %v1151_v8  ;;  %v1168_v1 = vmul.f32 %v3421_v47, %v1152_v6  ;;  %v1155_v20 = vld [vmem:[#allocation3 + $0x58] sm:$0xff] }
 0x357   : > { %v2432_v59 = vpop.eup %2431  ;;  %v1171_v2 = vmul.f32 %v3441_v45, %v1155_v20  ;;  %v1159_v45 = vld [vmem:[#allocation3 + $0x78] sm:$0xff]  ;;  %v1251_v20 = vld [vmem:[#allocation4 + $0x50] sm:$0xff] }
 0x358   : > { %v1143_v16 = vsel %vm3299_vm0, %v2432_v59, 0.0  ;;  %v1973_v39 = vpack.c.bf16 %v2432_v59, %v2430_v50  ;;  %v3538_v23 = vpop.eup %2433  ;;  %v3554_v21 = vpop.permute.xlu1 %1284 }
 0x359   : > { %1206 = vadd.xlane.f32.xlu0 %v1143_v16  ;;  %v3541_v15 = vpop.eup %2435  ;;  %v3564_v14 = vpop.permute.xlu0 %1309  ;;  %v1154_v16 = vld [vmem:[#allocation3 + $0x50] sm:$0xff] }
 0x35a   : > { %2186 = vmatmul.mubr.msk.bf16.gmra.mrb[28].mxu0 %vm1972_vm5, %v1973_v39  ;;  %v1169_v39 = vmul.f32 %v3438_v55, %v1153_v40  ;;  %v1170_v52 = vmul.f32 %v3428_v13, %v1154_v16  ;;  %v1157_v55 = vld [vmem:[#allocation3 + $0x68] sm:$0xff] }
 0x35b   : > { %v1173_v30 = vmul.f32 %v3444_v54, %v1157_v55  ;;  %v1243_v54 = vld [vmem:[#allocation4 + $0x10] sm:$0xff] }
 0x35c   : > { %v3558_v10 = vpop.permute.xlu1 %1294 }
 0x35d   : > { %v3568_v7 = vpop.permute.xlu0 %1319 }
 0x360   : > { %v3562_v19 = vpop.permute.xlu1 %1304 }
 0x364   : > { %v3566_v57 = vpop.permute.xlu1 %1314 }
 0x367   : > { %1334 = vperm.xlu1 %2372, %v3538_v23  }
 0x368   : > { %v3571_v56 = vpop.permute.xlu1 %1324 }
 0x36f   : > { %1329 = vperm.xlu0 %2371, %v3541_v15  }
 0x3c6   : > { %v1177_v24 = vpop.xlane.xlu0 %1176 }
 0x3c7   : > { %v1208_v27 = vadd.f32 %v1177_v24, %v1160_v63  ;;  %v1156_v24 = vld [vmem:[#allocation3 + $0x60] sm:$0xff] }
 0x3c9   : > { %1225 = vst.msk [vmem:[#allocation3] sm:$0xff] %vm1224_vm13, %v1208_v27  ;;  %v1172_v27 = vmul.f32 %v3434_v22, %v1156_v24  ;;  %v1175_v22 = vmul.f32 %v3538_v23, %v1159_v45  ;;  %v1250_v24 = vld [vmem:[#allocation4 + $0x48] sm:$0xff] }
 0x3ca   : > { %v1183_v34 = vpop.xlane.xlu0 %1182  ;;  %v1254_v45 = vld [vmem:[#allocation4 + $0x68] sm:$0xff] }
 0x3cb   : > { %v1179_v51 = vpop.xlane.xlu1 %1178  ;;  %v1211_v17 = vadd.f32 %v1183_v34, %v1163_v18  ;;  %v1158_v34 = vld [vmem:[#allocation3 + $0x70] sm:$0xff] }
 0x3cc   : > { %v1209_v28 = vadd.f32 %v1179_v51, %v1161_v29  ;;  %v1174_v51 = vmul.f32 %v3541_v15, %v1158_v34  ;;  %v1339_v15 = vmul.f32 %v3546_v35, %v1243_v54  ;;  %v1248_v35 = vld [vmem:[#allocation4 + $0x38] sm:$0xff] }
 0x3cd   : > { %1228 = vst.msk [vmem:[#allocation3 + $0x18] sm:$0xff] %vm1224_vm13, %v1211_v17 }
 0x3ce   : > { %1226 = vst.msk [vmem:[#allocation3 + $0x8] sm:$0xff] %vm1224_vm13, %v1209_v28  ;;  %v1181_v41 = vpop.xlane.xlu0 %1180 }
 0x3cf   : > { %v1185_v44 = vpop.xlane.xlu1 %1184  ;;  %v1210_v38 = vadd.f32 %v1181_v41, %v1162_v61 }
 0x3d0   : > { %v1212_v4 = vadd.f32 %v1185_v44, %v1164_v48  ;;  %v1244_v44 = vld [vmem:[#allocation4 + $0x18] sm:$0xff] }
 0x3d1   : > { %1227 = vst.msk [vmem:[#allocation3 + $0x10] sm:$0xff] %vm1224_vm13, %v1210_v38  ;;  %v1242_v38 = vld [vmem:[#allocation4 + $0x8] sm:$0xff] }
 0x3d2   : > { %1229 = vst.msk [vmem:[#allocation3 + $0x20] sm:$0xff] %vm1224_vm13, %v1212_v4  ;;  %v1187_v58 = vpop.xlane.xlu0 %1186  ;;  %v1338_v23 = vmul.f32 %v3548_v60, %v1242_v38  ;;  %v1344_v60 = vmul.f32 %v3558_v10, %v1248_v35 }
 0x3d3   : > { %v1189_v0 = vpop.xlane.xlu1 %1188  ;;  %v1213_v50 = vadd.f32 %v1187_v58, %v1165_v9  ;;  %v1340_v9 = vmul.f32 %v3550_v25, %v1244_v44 }
 0x3d4   : > { %v1214_v33 = vadd.f32 %v1189_v0, %v1166_v42 }
 0x3d5   : > { %1230 = vst.msk [vmem:[#allocation3 + $0x28] sm:$0xff] %vm1224_vm13, %v1213_v50 }
 0x3d6   : > { %1231 = vst.msk [vmem:[#allocation3 + $0x30] sm:$0xff] %vm1224_vm13, %v1214_v33  ;;  %v1191_v59 = vpop.xlane.xlu0 %1190  ;;  %v1247_v33 = vld [vmem:[#allocation4 + $0x30] sm:$0xff] }
 0x3d7   : > { %v1193_v5 = vpop.xlane.xlu1 %1192  ;;  %v1215_v49 = vadd.f32 %v1191_v59, %v1167_v26  ;;  %v1343_v53 = vmul.f32 %v3556_v43, %v1247_v33  ;;  %v1246_v59 = vld [vmem:[#allocation4 + $0x28] sm:$0xff]  ;;  %v1252_v43 = vld [vmem:[#allocation4 + $0x58] sm:$0xff] }
 0x3d8   : > { %v1216_v32 = vadd.f32 %v1193_v5, %v1168_v1  ;;  %v1245_v1 = vld [vmem:[#allocation4 + $0x20] sm:$0xff]  ;;  %v1342_v16 = vmul.f32 %v3554_v21, %v1246_v59  ;;  %v1348_v21 = vmul.f32 %v3566_v57, %v1252_v43 }
 0x3d9   : > { %1232 = vst.msk [vmem:[#allocation3 + $0x38] sm:$0xff] %vm1224_vm13, %v1215_v49  ;;  %v1341_v25 = vmul.f32 %v3552_v3, %v1245_v1  ;;  %v1347_v3 = vmul.f32 %v3564_v14, %v1251_v20  ;;  %v1253_v14 = vld [vmem:[#allocation4 + $0x60] sm:$0xff] }
 0x3da   : > { %1233 = vst.msk [vmem:[#allocation3 + $0x40] sm:$0xff] %vm1224_vm13, %v1216_v32  ;;  %v1195_v62 = vpop.xlane.xlu0 %1194 }
 0x3db   : > { %v1197_v46 = vpop.xlane.xlu1 %1196  ;;  %v1217_v63 = vadd.f32 %v1195_v62, %v1169_v39 }
 0x3dc   : > { %v1218_v47 = vadd.f32 %v1197_v46, %v1170_v52 }
 0x3dd   : > { %1234 = vst.msk [vmem:[#allocation3 + $0x48] sm:$0xff] %vm1224_vm13, %v1217_v63  ;;  %v1249_v63 = vld [vmem:[#allocation4 + $0x40] sm:$0xff] }
 0x3de   : > { %1235 = vst.msk [vmem:[#allocation3 + $0x50] sm:$0xff] %vm1224_vm13, %v1218_v47  ;;  %v1199_v12 = vpop.xlane.xlu0 %1198  ;;  %v1345_v10 = vmul.f32 %v3560_v11, %v1249_v63 }
 0x3df   : > { %v1201_v18 = vpop.xlane.xlu1 %1200  ;;  %v1219_v29 = vadd.f32 %v1199_v12, %v1171_v2  ;;  %v1346_v12 = vmul.f32 %v3562_v19, %v1250_v24 }
 0x3e0   : > { %v1220_v13 = vadd.f32 %v1201_v18, %v1172_v27  ;;  %v1525_v33 = vld [vmem:[#allocation3 + $0x38] sm:$0xff] (!%p1975_p1) }
 0x3e1   : > { %1236 = vst.msk [vmem:[#allocation3 + $0x58] sm:$0xff] %vm1224_vm13, %v1219_v29  ;;  %v1541_v1 = vmax.f32 (!%p1975_p1), %v1525_v33, 1e-30  ;;  %v1526_v59 = vld [vmem:[#allocation3 + $0x40] sm:$0xff] (!%p1975_p1) }
 0x3e2   : > { %1237 = vst.msk [vmem:[#allocation3 + $0x60] sm:$0xff] %vm1224_vm13, %v1220_v13  ;;  %v1203_v17 = vpop.xlane.xlu0 %1202  ;;  %v1255_v13 = vld [vmem:[#allocation4 + $0x70] sm:$0xff] }
 0x3e3   : > { %v1205_v37 = vpop.xlane.xlu1 %1204  ;;  %v1221_v28 = vadd.f32 %v1203_v17, %v1173_v30  ;;  %v1256_v17 = vld [vmem:[#allocation4 + $0x78] sm:$0xff] }
 0x3e4   : > { %v1222_v61 = vadd.f32 %v1205_v37, %v1174_v51  ;;  %v1349_v37 = vmul.f32 %v3568_v7, %v1253_v14  ;;  %v1518_v7 = vld [vmem:[#allocation3] sm:$0xff] (!%p1975_p1) }
 0x3e5   : > { %1238 = vst.msk [vmem:[#allocation3 + $0x68] sm:$0xff] %vm1224_vm13, %v1221_v28 }
 0x3e6   : > { %1239 = vst.msk [vmem:[#allocation3 + $0x70] sm:$0xff] %vm1224_vm13, %v1222_v61  ;;  %v1207_v48 = vpop.xlane.xlu0 %1206 }
 0x3e7   : > { %v1223_v41 = vadd.f32 %v1207_v48, %v1175_v22  ;;  %v1335_v11 = vpop.permute.xlu1 %1334  ;;  %v1350_v48 = vmul.f32 %v3571_v56, %v1254_v45  ;;  %v1534_v56 = vmax.f32 (!%p1975_p1), %v1518_v7, 1e-30 }
 0x3e8   : > { %v1352_v19 = vmul.f32 %v1335_v11, %v1256_v17 }
 0x3e9   : > { %1240 = vst.msk [vmem:[#allocation3 + $0x78] sm:$0xff] %vm1224_vm13, %v1223_v41  ;;  %v1530_v63 = vld [vmem:[#allocation3 + $0x60] sm:$0xff] (!%p1975_p1) }
 0x3ea   : > { %v1546_v24 = vmax.f32 (!%p1975_p1), %v1530_v63, 1e-30 }
 0x3ec   : > { %v1531_v20 = vld [vmem:[#allocation3 + $0x68] sm:$0xff] (!%p1975_p1) }
 0x3ee   : > { %v1330_v30 = vpop.permute.xlu0 %1329 }
 0x3ef   : > { %v1351_v57 = vmul.f32 %v1330_v30, %v1255_v13 }
 0x415   : > { %v2175_v4 = vpop.f32.mrb[16].mxu0 }
 0x416   : > { %v1468_v42 = vadd.f32 %v2175_v4, %v1339_v15  ;;  %v1403_v58 = vpop.f32.mrb[17].mxu0  ;;  %v1520_v15 = vld [vmem:[#allocation3 + $0x10] sm:$0xff] (!%p1975_p1)  ;;  %v2713_v4 = vmov (!%p1975_p1), 0  }
 0x417   : > { %v1466_v8 = vadd.f32 %v1403_v58, %v1337_v31  ;;  %v2176_v0 = vpop.f32.mrb[18].mxu0  ;;  %v1521_v31 = vld [vmem:[#allocation3 + $0x18] sm:$0xff] (!%p1975_p1)  ;;  %2438 = vset.pattern.permute.xlu1 (!%p1975_p1), %v2713_v4  ;;  %2437 = vset.pattern.permute.xlu0 (!%p1975_p1), %v2713_v4  ;;  %v1519_v58 = vld [vmem:[#allocation3 + $0x8] sm:$0xff] (!%p1975_p1) }
 0x418   : > { %1484 = vst [vmem:[#allocation4 + $0x10] sm:$0xff] %v1468_v42  ;;  %v1469_v50 = vadd.f32 %v2176_v0, %v1340_v9  ;;  %v1406_v6 = vpop.f32.mrb[19].mxu0  ;;  %v1536_v9 = vmax.f32 (!%p1975_p1), %v1520_v15, 1e-30  ;;  %v1537_v42 = vmax.f32 (!%p1975_p1), %v1521_v31, 1e-30 }
 0x419   : > { %1482 = vst [vmem:[#allocation4] sm:$0xff] %v1466_v8  ;;  %v1467_v26 = vadd.f32 %v1406_v6, %v1338_v23  ;;  %v1523_v23 = vld [vmem:[#allocation3 + $0x28] sm:$0xff] (!%p1975_p1)  ;;  %v1535_v8 = vmax.f32 (!%p1975_p1), %v1519_v58, 1e-30  ;;  %v1522_v0 = vld [vmem:[#allocation3 + $0x20] sm:$0xff] (!%p1975_p1) }
 0x41a   : > { %1485 = vst [vmem:[#allocation4 + $0x18] sm:$0xff] %v1469_v50  ;;  %2439 = vrcp.f32 (!%p1975_p1), %v1536_v9  ;;  %v1539_v50 = vmax.f32 (!%p1975_p1), %v1523_v23, 1e-30  ;;  %v1538_v6 = vmax.f32 (!%p1975_p1), %v1522_v0, 1e-30 }
 0x41b   : > { %1483 = vst [vmem:[#allocation4 + $0x8] sm:$0xff] %v1467_v26  ;;  %2441 = vrcp.f32 (!%p1975_p1), %v1534_v56  ;;  %v1524_v26 = vld [vmem:[#allocation3 + $0x30] sm:$0xff] (!%p1975_p1) }
 0x41c   : > { %2443 = vrcp.f32 (!%p1975_p1), %v1537_v42  ;;  %v1540_v35 = vmax.f32 (!%p1975_p1), %v1524_v26, 1e-30 }
 0x41d   : > { %v2179_v40 = vpop.f32.mrb[20].mxu0  ;;  %2445 = vrcp.f32 (!%p1975_p1), %v1535_v8 }
 0x41e   : > { %v1472_v5 = vadd.f32 %v2179_v40, %v1343_v53  ;;  %v1419_v49 = vpop.f32.mrb[21].mxu0  ;;  %2447 = vrcp.f32 (!%p1975_p1), %v1539_v50  ;;  %v1527_v53 = vld [vmem:[#allocation3 + $0x48] sm:$0xff] (!%p1975_p1) }
 0x41f   : > { %v1470_v32 = vadd.f32 %v1419_v49, %v1341_v25  ;;  %v2180_v39 = vpop.f32.mrb[22].mxu0  ;;  %2449 = vrcp.f32 (!%p1975_p1), %v1538_v6  ;;  %v1543_v40 = vmax.f32 (!%p1975_p1), %v1527_v53, 1e-30  ;;  %v1529_v49 = vld [vmem:[#allocation3 + $0x58] sm:$0xff] (!%p1975_p1)  ;;  %v1568_v17 = vld [vmem:[#allocation4 + $0x10] sm:$0xff] (!%p1975_p1) }
 0x420   : > { %1488 = vst [vmem:[#allocation4 + $0x30] sm:$0xff] %v1472_v5  ;;  %v1473_v52 = vadd.f32 %v2180_v39, %v1344_v60  ;;  %v1422_v62 = vpop.f32.mrb[23].mxu0  ;;  %2451 = vrcp.f32 (!%p1975_p1), %v1541_v1  ;;  %v1542_v5 = vmax.f32 (!%p1975_p1), %v1526_v59, 1e-30  ;;  %v1566_v11 = vld [vmem:[#allocation4] sm:$0xff] (!%p1975_p1) }
 0x421   : > { %1486 = vst [vmem:[#allocation4 + $0x20] sm:$0xff] %v1470_v32  ;;  %v1471_v46 = vadd.f32 %v1422_v62, %v1342_v16  ;;  %2453 = vrcp.f32 (!%p1975_p1), %v1540_v35  ;;  %v1528_v32 = vld [vmem:[#allocation3 + $0x50] sm:$0xff] (!%p1975_p1) }
 0x422   : > { %1489 = vst [vmem:[#allocation4 + $0x38] sm:$0xff] %v1473_v52  ;;  %2455 = vrcp.f32 (!%p1975_p1), %v1543_v40  ;;  %v1545_v52 = vmax.f32 (!%p1975_p1), %v1529_v49, 1e-30  ;;  %v1544_v62 = vmax.f32 (!%p1975_p1), %v1528_v32, 1e-30 }
 0x423   : > { %1487 = vst [vmem:[#allocation4 + $0x28] sm:$0xff] %v1471_v46  ;;  %2457 = vrcp.f32 (!%p1975_p1), %v1542_v5 }
 0x424   : > { %v2440_v25 = vpop.eup (!%p1975_p1), %2439  ;;  %2459 = vrcp.f32 (!%p1975_p1), %v1545_v52 }
 0x425   : > { %v2183_v47 = vpop.f32.mrb[24].mxu0  ;;  %v2442_v60 = vpop.eup (!%p1975_p1), %2441  ;;  %1594 = vperm.xlu1 (!%p1975_p1), %2438, %v2440_v25   ;;  %2461 = vrcp.f32 (!%p1975_p1), %v1544_v62 }
 0x426   : > { %v1476_v2 = vadd.f32 %v2183_v47, %v1347_v3  ;;  %v1435_v27 = vpop.f32.mrb[25].mxu0  ;;  %v2444_v16 = vpop.eup (!%p1975_p1), %2443  ;;  %1584 = vperm.xlu0 (!%p1975_p1), %2437, %v2442_v60   ;;  %v1547_v3 = vmax.f32 (!%p1975_p1), %v1531_v20, 1e-30 }
 0x427   : > { %v1474_v55 = vadd.f32 %v1435_v27, %v1345_v10  ;;  %v2184_v18 = vpop.f32.mrb[26].mxu0  ;;  %v2446_v39 = vpop.eup (!%p1975_p1), %2445  ;;  %v1533_v10 = vld [vmem:[#allocation3 + $0x78] sm:$0xff] (!%p1975_p1)  ;;  %v1572_v33 = vld [vmem:[#allocation4 + $0x30] sm:$0xff] (!%p1975_p1) }
 0x428   : > { %1492 = vst [vmem:[#allocation4 + $0x50] sm:$0xff] %v1476_v2  ;;  %v1477_v29 = vadd.f32 %v2184_v18, %v1348_v21  ;;  %v1438_v34 = vpop.f32.mrb[27].mxu0  ;;  %v2448_v46 = vpop.eup (!%p1975_p1), %2447  ;;  %v1532_v21 = vld [vmem:[#allocation3 + $0x70] sm:$0xff] (!%p1975_p1)  ;;  %2463 = vrcp.f32 (!%p1975_p1), %v1547_v3  ;;  %v1549_v27 = vmax.f32 (!%p1975_p1), %v1533_v10, 1e-30  ;;  %v1570_v4 = vld [vmem:[#allocation4 + $0x20] sm:$0xff] (!%p1975_p1) }
 0x429   : > { %1490 = vst [vmem:[#allocation4 + $0x40] sm:$0xff] %v1474_v55  ;;  %v1475_v51 = vadd.f32 %v1438_v34, %v1346_v12  ;;  %1599 = vperm.xlu1 (!%p1975_p1), %2438, %v2444_v16   ;;  %v2450_v43 = vpop.eup (!%p1975_p1), %2449  ;;  %2465 = vrcp.f32 (!%p1975_p1), %v1546_v24  ;;  %v1548_v12 = vmax.f32 (!%p1975_p1), %v1532_v21, 1e-30  ;;  %v1573_v50 = vld [vmem:[#allocation4 + $0x38] sm:$0xff] (!%p1975_p1) }
 0x42a   : > { %1493 = vst [vmem:[#allocation4 + $0x58] sm:$0xff] %v1477_v29  ;;  %1589 = vperm.xlu0 (!%p1975_p1), %2437, %v2446_v39   ;;  %v2452_v47 = vpop.eup (!%p1975_p1), %2451  ;;  %2467 = vrcp.f32 (!%p1975_p1), %v1549_v27  ;;  %v1571_v7 = vld [vmem:[#allocation4 + $0x28] sm:$0xff] (!%p1975_p1) }
 0x42b   : > { %1491 = vst [vmem:[#allocation4 + $0x48] sm:$0xff] %v1475_v51  ;;  %v2454_v2 = vpop.eup (!%p1975_p1), %2453  ;;  %2469 = vrcp.f32 (!%p1975_p1), %v1548_v12 }
 0x42c   : > { %v2456_v55 = vpop.eup (!%p1975_p1), %2455 }
 0x42d   : > { %v2187_v28 = vpop.f32.mrb[28].mxu0  ;;  %1517 = sbr.rel (%p1975_p1) target bundleno = 1239 (0x4d7), region = 94  ;;  %1609 = vperm.xlu1 (!%p1975_p1), %2438, %v2448_v46   ;;  %v2458_v18 = vpop.eup (!%p1975_p1), %2457 }
 0x42e   : > { %v1480_v61 = vadd.f32 %v2187_v28, %v1351_v57  ;;  %v1451_v22 = vpop.f32.mrb[29].mxu0  ;;  %1604 = vperm.xlu0 (!%p1975_p1), %2437, %v2450_v43   ;;  %v2460_v29 = vpop.eup (!%p1975_p1), %2459 }
 0x42f   : > { %v1478_v41 = vadd.f32 %v1451_v22, %v1349_v37  ;;  %v2188_v54 = vpop.f32.mrb[30].mxu0  ;;  %v2462_v34 = vpop.eup (!%p1975_p1), %2461  ;;  %v1567_v22 = vld [vmem:[#allocation4 + $0x8] sm:$0xff] (!%p1975_p1)  ;;  %v1576_v21 = vld [vmem:[#allocation4 + $0x50] sm:$0xff] (!%p1975_p1) }
 0x430   : > { %1496 = vst [vmem:[#allocation4 + $0x70] sm:$0xff] %v1480_v61  ;;  %v1481_v36 = vadd.f32 %v2188_v54, %v1352_v19  ;;  %v1454_v44 = vpop.f32.mrb[31].mxu0  ;;  %v1569_v19 = vld [vmem:[#allocation4 + $0x18] sm:$0xff] (!%p1975_p1)  ;;  %v1574_v49 = vld [vmem:[#allocation4 + $0x40] sm:$0xff] (!%p1975_p1) }
 0x431   : > { %1494 = vst [vmem:[#allocation4 + $0x60] sm:$0xff] %v1478_v41  ;;  %v1479_v38 = vadd.f32 %v1454_v44, %v1350_v48  ;;  %1619 = vperm.xlu1 (!%p1975_p1), %2438, %v2452_v47   ;;  %v1577_v24 = vld [vmem:[#allocation4 + $0x58] sm:$0xff] (!%p1975_p1) }
 0x432   : > { %1497 = vst [vmem:[#allocation4 + $0x78] sm:$0xff] %v1481_v36  ;;  %1614 = vperm.xlu0 (!%p1975_p1), %2437, %v2454_v2   ;;  %v2464_v13 = vpop.eup (!%p1975_p1), %2463  ;;  %v1575_v60 = vld [vmem:[#allocation4 + $0x48] sm:$0xff] (!%p1975_p1) }
 0x433   : > { %1495 = vst [vmem:[#allocation4 + $0x68] sm:$0xff] %v1479_v38  ;;  %v2466_v30 = vpop.eup (!%p1975_p1), %2465 }
 0x434   : > { %v2468_v51 = vpop.eup %2467 }
 0x435   : > { %1629 = vperm.xlu1 %2438, %v2456_v55   ;;  %v2470_v14 = vpop.eup %2469 }
 0x436   : > { %1624 = vperm.xlu0 %2437, %v2458_v18  }
 0x439   : > { %1639 = vperm.xlu1 %2438, %v2460_v29  }
 0x43a   : > { %1634 = vperm.xlu0 %2437, %v2462_v34  }
 0x43d   : > { %1649 = vperm.xlu1 %2438, %v2464_v13  }
 0x43e   : > { %1644 = vperm.xlu0 %2437, %v2466_v30  }
 0x441   : > { %1659 = vperm.xlu1 %2438, %v2468_v51  }
 0x442   : > { %1654 = vperm.xlu0 %2437, %v2470_v14  }
 0x4a4   : > { %v1595_v45 = vpop.permute.xlu1 %1594 }
 0x4a5   : > { %v1664_v57 = vmul.f32 %v1595_v45, %v1568_v17  ;;  %v1585_v37 = vpop.permute.xlu0 %1584 }
 0x4a6   : > { %v3619_v28 = vmul.f32 %v1585_v37, %v1566_v11  ;;  %v1579_v11 = vld [vmem:[#allocation4 + $0x68] sm:$0xff]  ;;  %v1578_v37 = vld [vmem:[#allocation4 + $0x60] sm:$0xff] }
 0x4a7   : > { %v1696_v61 = vmin.f32 %v1664_v57, 0.0  ;;  %vm1680_vm6 = vcmp.gt.f32.partialorder %v1664_v57, 0.0 }
 0x4a8   : > { %v1694_v48 = vmin.f32 %v3619_v28, 0.0  ;;  %v1600_v41 = vpop.permute.xlu1 %1599  ;;  %vm1678_vm0 = vcmp.gt.f32.partialorder %v3619_v28, 0.0 }
 0x4a9   : > { %v1714_v54 = vmul.f32 1.442695, %v1696_v61  ;;  %v3622_v36 = vmul.f32 %v1600_v41, %v1569_v19  ;;  %v1590_v44 = vpop.permute.xlu0 %1589 }
 0x4aa   : > { %v1710_v38 = vmul.f32 1.442695, %v1694_v48  ;;  %v3624_v15 = vmul.f32 %v1590_v44, %v1567_v22 }
 0x4ab   : > { %2471 = vpow2.f32 %v1714_v54  ;;  %v1697_v31 = vmin.f32 %v3622_v36, 0.0  ;;  %vm1681_vm10 = vcmp.gt.f32.partialorder %v3622_v36, 0.0 }
 0x4ac   : > { %2473 = vpow2.f32 %v1710_v38  ;;  %v1695_v9 = vmin.f32 %v3624_v15, 0.0  ;;  %v1610_v56 = vpop.permute.xlu1 %1609  ;;  %vm1679_vm2 = vcmp.gt.f32.partialorder %v3624_v15, 0.0 }
 0x4ad   : > { %v1716_v42 = vmul.f32 1.442695, %v1697_v31  ;;  %v3628_v58 = vmul.f32 %v1610_v56, %v1571_v7  ;;  %v1605_v23 = vpop.permute.xlu0 %1604 }
 0x4ae   : > { %v1712_v8 = vmul.f32 1.442695, %v1695_v9  ;;  %v3630_v0 = vmul.f32 %v1605_v23, %v1570_v4  ;;  %v1581_v4 = vld [vmem:[#allocation4 + $0x78] sm:$0xff] }
 0x4af   : > { %2475 = vpow2.f32 %v1716_v42  ;;  %v1699_v6 = vmin.f32 %v3628_v58, 0.0  ;;  %vm1683_vm13 = vcmp.gt.f32.partialorder %v3628_v58, 0.0 }
 0x4b0   : > { %2477 = vpow2.f32 %v1712_v8  ;;  %v1698_v26 = vmin.f32 %v3630_v0, 0.0  ;;  %v1620_v1 = vpop.permute.xlu1 %1619  ;;  %vm1682_vm8 = vcmp.gt.f32.partialorder %v3630_v0, 0.0 }
 0x4b1   : > { %v1720_v35 = vmul.f32 1.442695, %v1699_v6  ;;  %v3634_v53 = vmul.f32 %v1620_v1, %v1573_v50  ;;  %v1615_v59 = vpop.permute.xlu0 %1614 }
 0x4b2   : > { %v1718_v25 = vmul.f32 1.442695, %v1698_v26  ;;  %v3636_v40 = vmul.f32 %v1615_v59, %v1572_v33 }
 0x4b3   : > { %2479 = vpow2.f32 %v1720_v35  ;;  %v1701_v5 = vmin.f32 %v3634_v53, 0.0  ;;  %vm1685_vm14 = vcmp.gt.f32.partialorder %v3634_v53, 0.0 }
 0x4b4   : > { %2481 = vpow2.f32 %v1718_v25  ;;  %v1700_v16 = vmin.f32 %v3636_v40, 0.0  ;;  %v1630_v32 = vpop.permute.xlu1 %1629  ;;  %vm1684_vm3 = vcmp.gt.f32.partialorder %v3636_v40, 0.0 }
 0x4b5   : > { %v2472_v39 = vpop.eup %2471  ;;  %v1724_v52 = vmul.f32 1.442695, %v1701_v5  ;;  %v3640_v62 = vmul.f32 %v1630_v32, %v1575_v60  ;;  %v1625_v20 = vpop.permute.xlu0 %1624 }
 0x4b6   : > { %v2474_v46 = vpop.eup %2473  ;;  %v1978_v63 = vadd.f32 -1.0, %v2472_v39  ;;  %v1722_v43 = vmul.f32 1.442695, %v1700_v16  ;;  %v3642_v3 = vmul.f32 %v1625_v20, %v1574_v49 }
 0x4b7   : > { %v1976_v10 = vadd.f32 -1.0, %v2474_v46  ;;  %2483 = vpow2.f32 %v1724_v52  ;;  %v1703_v47 = vmin.f32 %v3640_v62, 0.0  ;;  %vm1687_vm4 = vcmp.gt.f32.partialorder %v3640_v62, 0.0 }
 0x4b8   : > { %v1760_v2 = vsel %vm1680_vm6, %v1664_v57, %v1978_v63  ;;  %2485 = vpow2.f32 %v1722_v43  ;;  %v1702_v27 = vmin.f32 %v3642_v3, 0.0  ;;  %v1640_v12 = vpop.permute.xlu1 %1639  ;;  %vm1686_vm7 = vcmp.gt.f32.partialorder %v3642_v3, 0.0 }
 0x4b9   : > { %v2476_v55 = vpop.eup %2475  ;;  %1776 = vst [vmem:[%s3012_s9 + $0x10] sm:$0xff] %v1760_v2  ;;  %v1758_v18 = vsel %vm1678_vm0, %v3619_v28, %v1976_v10  ;;  %v1728_v29 = vmul.f32 1.442695, %v1703_v47  ;;  %v3649_v34 = vmul.f32 %v1640_v12, %v1577_v24  ;;  %v1635_v13 = vpop.permute.xlu0 %1634 }
 0x4ba   : > { %v2478_v30 = vpop.eup %2477  ;;  %1774 = vst [vmem:[%s3012_s9] sm:$0xff] %v1758_v18  ;;  %v1979_v51 = vadd.f32 -1.0, %v2476_v55  ;;  %v1726_v14 = vmul.f32 1.442695, %v1702_v27  ;;  %v3652_v17 = vmul.f32 %v1635_v13, %v1576_v21 }
 0x4bb   : > { %v1977_v45 = vadd.f32 -1.0, %v2478_v30  ;;  %2487 = vpow2.f32 %v1728_v29  ;;  %v1705_v57 = vmin.f32 %v3649_v34, 0.0  ;;  %vm1689_vm9 = vcmp.gt.f32.partialorder %v3649_v34, 0.0 }
 0x4bc   : > { %v1761_v28 = vsel %vm1681_vm10, %v3622_v36, %v1979_v51  ;;  %2489 = vpow2.f32 %v1726_v14  ;;  %v1704_v19 = vmin.f32 %v3652_v17, 0.0  ;;  %v1650_v61 = vpop.permute.xlu1 %1649  ;;  %vm1688_vm11 = vcmp.gt.f32.partialorder %v3652_v17, 0.0 }
 0x4bd   : > { %v2480_v22 = vpop.eup %2479  ;;  %1777 = vst [vmem:[%s3012_s9 + $0x18] sm:$0xff] %v1761_v28  ;;  %v1759_v48 = vsel %vm1679_vm2, %v3624_v15, %v1977_v45  ;;  %v1732_v41 = vmul.f32 1.442695, %v1705_v57  ;;  %v3661_v54 = vmul.f32 %v1650_v61, %v1579_v11  ;;  %v1645_v44 = vpop.permute.xlu0 %1644  ;;  %v1580_v15 = vld [vmem:[#allocation4 + $0x70] sm:$0xff] }
 0x4be   : > { %v2482_v38 = vpop.eup %2481  ;;  %1775 = vst [vmem:[%s3012_s9 + $0x8] sm:$0xff] %v1759_v48  ;;  %v1981_v7 = vadd.f32 -1.0, %v2480_v22  ;;  %v1730_v31 = vmul.f32 1.442695, %v1704_v19  ;;  %v3664_v36 = vmul.f32 %v1645_v44, %v1578_v37 }
 0x4bf   : > { %v1980_v9 = vadd.f32 -1.0, %v2482_v38  ;;  %2491 = vpow2.f32 %v1732_v41  ;;  %v1707_v56 = vmin.f32 %v3661_v54, 0.0  ;;  %vm1691_vm12 = vcmp.gt.f32.partialorder %v3661_v54, 0.0 }
 0x4c0   : > { %v1763_v42 = vsel %vm1683_vm13, %v3628_v58, %v1981_v7  ;;  %2493 = vpow2.f32 %v1730_v31  ;;  %v1706_v23 = vmin.f32 %v3664_v36, 0.0  ;;  %v1660_v8 = vpop.permute.xlu1 %1659  ;;  %vm1690_vm15 = vcmp.gt.f32.partialorder %v3664_v36, 0.0 }
 0x4c1   : > { %v2484_v50 = vpop.eup %2483  ;;  %1779 = vst [vmem:[%s3012_s9 + $0x28] sm:$0xff] %v1763_v42  ;;  %v1762_v6 = vsel %vm1682_vm8, %v3630_v0, %v1980_v9  ;;  %v1736_v33 = vmul.f32 1.442695, %v1707_v56  ;;  %v1677_v26 = vmul.f32 %v1660_v8, %v1581_v4  ;;  %v1655_v1 = vpop.permute.xlu0 %1654 }
 0x4c2   : > { %v2486_v35 = vpop.eup %2485  ;;  %1778 = vst [vmem:[%s3012_s9 + $0x20] sm:$0xff] %v1762_v6  ;;  %v1983_v59 = vadd.f32 -1.0, %v2484_v50  ;;  %v1734_v25 = vmul.f32 1.442695, %v1706_v23  ;;  %v1676_v58 = vmul.f32 %v1655_v1, %v1580_v15 }
 0x4c3   : > { %v1982_v60 = vadd.f32 -1.0, %v2486_v35  ;;  %2495 = vpow2.f32 %v1736_v33  ;;  %v1709_v5 = vmin.f32 %v1677_v26, 0.0  ;;  %vm1693_vm1 = vcmp.gt.f32.partialorder %v1677_v26, 0.0 }
 0x4c4   : > { %v1765_v49 = vsel %vm1685_vm14, %v3634_v53, %v1983_v59  ;;  %2497 = vpow2.f32 %v1734_v25  ;;  %v1708_v0 = vmin.f32 %v1676_v58, 0.0  ;;  %vm1692_vm5 = vcmp.gt.f32.partialorder %v1676_v58, 0.0 }
 0x4c5   : > { %v2488_v16 = vpop.eup %2487  ;;  %1781 = vst [vmem:[%s3012_s9 + $0x38] sm:$0xff] %v1765_v49  ;;  %v1764_v32 = vsel %vm1684_vm3, %v3636_v40, %v1982_v60  ;;  %v1740_v39 = vmul.f32 1.442695, %v1709_v5 }
 0x4c6   : > { %v2490_v52 = vpop.eup %2489  ;;  %1780 = vst [vmem:[%s3012_s9 + $0x30] sm:$0xff] %v1764_v32  ;;  %v1985_v20 = vadd.f32 -1.0, %v2488_v16  ;;  %v1738_v46 = vmul.f32 1.442695, %v1708_v0 }
 0x4c7   : > { %v1984_v63 = vadd.f32 -1.0, %v2490_v52  ;;  %2499 = vpow2.f32 %v1740_v39 }
 0x4c8   : > { %v1767_v53 = vsel %vm1687_vm4, %v3640_v62, %v1985_v20  ;;  %2501 = vpow2.f32 %v1738_v46 }
 0x4c9   : > { %v2492_v43 = vpop.eup %2491  ;;  %1783 = vst [vmem:[%s3012_s9 + $0x48] sm:$0xff] %v1767_v53  ;;  %v1766_v40 = vsel %vm1686_vm7, %v3642_v3, %v1984_v63 }
 0x4ca   : > { %v2494_v24 = vpop.eup %2493  ;;  %1782 = vst [vmem:[%s3012_s9 + $0x40] sm:$0xff] %v1766_v40  ;;  %v1987_v10 = vadd.f32 -1.0, %v2492_v43 }
 0x4cb   : > { %v1986_v47 = vadd.f32 -1.0, %v2494_v24 }
 0x4cc   : > { %v1769_v21 = vsel %vm1689_vm9, %v3649_v34, %v1987_v10 }
 0x4cd   : > { %v2496_v62 = vpop.eup %2495  ;;  %1785 = vst [vmem:[%s3012_s9 + $0x58] sm:$0xff] %v1769_v21  ;;  %v1768_v2 = vsel %vm1688_vm11, %v3652_v17, %v1986_v47 }
 0x4ce   : > { %v2498_v27 = vpop.eup %2497  ;;  %1784 = vst [vmem:[%s3012_s9 + $0x50] sm:$0xff] %v1768_v2  ;;  %v1989_v3 = vadd.f32 -1.0, %v2496_v62 }
 0x4cf   : > { %v1988_v12 = vadd.f32 -1.0, %v2498_v27 }
 0x4d0   : > { %v1771_v55 = vsel %vm1691_vm12, %v3661_v54, %v1989_v3 }
 0x4d1   : > { %v2500_v18 = vpop.eup %2499  ;;  %1787 = vst [vmem:[%s3012_s9 + $0x68] sm:$0xff] %v1771_v55  ;;  %v1770_v29 = vsel %vm1690_vm15, %v3664_v36, %v1988_v12 }
 0x4d2   : > { %v2502_v34 = vpop.eup %2501  ;;  %1786 = vst [vmem:[%s3012_s9 + $0x60] sm:$0xff] %v1770_v29  ;;  %v1991_v13 = vadd.f32 -1.0, %v2500_v18 }
 0x4d3   : > { %v1990_v30 = vadd.f32 -1.0, %v2502_v34 }
 0x4d4   : > { %v1773_v51 = vsel %vm1693_vm1, %v1677_v26, %v1991_v13 }
 0x4d5   : > { %1789 = vst [vmem:[%s3012_s9 + $0x78] sm:$0xff] %v1773_v51  ;;  %v1772_v14 = vsel %vm1692_vm5, %v1676_v58, %v1990_v30 }
 0x4d6   : > { %1788 = vst [vmem:[%s3012_s9 + $0x70] sm:$0xff] %v1772_v14 }
 0x4d7 PF: > { %s3873_s26 = sld [smem:[#allocation17_spill]]  ;;  %s3874_s13 = sld [smem:[#allocation23_spill]] }
 0x4d8   : > { %s3875_s27 = sld [smem:[#allocation27_spill]]  ;;  %s1804_s23 = sshll.u32 %s3012_s9, 4  ;;  %s3707_s23 = int_to_ptr.vmem [resolvable:$true] %s1804_s23 }
 0x4d9   : > { %s1791_s12 = scalar_lea.sflag [#allocation7], %s2992_s2  ;;  %s2559_s11 = scalar_lea.vmem %s3707_s23, 2048 }
 0x4da   : > { %p2560_p2 = scmp.ne.s32.totalorder %s3707_s23, %s2559_s11  ;;  %s2714_s25 = smov [#allocation11]  }
 0x4db   : > { %s2563_s0 = sshll.u32 %s2714_s25, 4  ;;  %s2564_s0 = int_to_ptr.vmem [resolvable:$false] %s2563_s0 }
 0x4dc   : > { %s2565_s7 = scalar_lea.vmem %s2564_s0, 4096  ;;  %p2566_p7 = scmp.lt.s32.totalorder %s3707_s23, %s2564_s0 }
 0x4dd   : > { %s2000_s5 = sshll.u32 %s3873_s26, 11  ;;  %p3877_p13 = scmp.ne.s32.totalorder %s3874_s13, 0 }
 0x4de   : > { %s3876_s14 = smov %s3875_s27  ;;  %s3704_s20 = scalar_lea.hbm %s3875_s27, %s2000_s5 }
 0x4df   : > { %p2561_p0 = pnand %p2560_p2, %p3877_p13  ;;  %p2567_p6 = scmp.lt.s32.totalorder %s2565_s7, %s2559_s11 }
 0x4e1   : > { %p2562_p3 = pneg %p2561_p0  ;;  %p2568_p9 = por %p2567_p6, %p2566_p7 }
 0x4e3   : > { %p2569_p12 = pnand %p2568_p9, %p2562_p3 }
 0x4e5   : > { %2572 = shalt.err (!%p2569_p12)
}
 0x4e6   : > { %s2573_s9 = scalar_lea.hbm %s3704_s20, 2048  ;;  %s2577_s15 = scalar_lea.hbm %s3876_s14, 4096 }
 0x4e7   : > { %p2574_p11 = scmp.ne.s32.totalorder %s3704_s20, %s2573_s9  ;;  %p2578_p8 = scmp.lt.u32.totalorder %s3704_s20, %s3876_s14 }
 0x4e8   : > { %p2579_p10 = scmp.lt.u32.totalorder %s2577_s15, %s2573_s9  ;;  %p2581_p2 = scmp.lt.u32.totalorder %s2573_s9, %s3704_s20 }
 0x4e9   : > { %p2575_p4 = pnand %p2574_p11, %p3877_p13 }
 0x4ea   : > { %p2580_p1 = por %p2579_p10, %p2578_p8 }
 0x4eb   : > { %p2576_p5 = pneg %p2575_p4 }
 0x4ec   : > { %p2582_p0 = por %p2581_p2, %p2580_p1 }
 0x4ee   : > { %p2583_p3 = pnand %p2582_p0, %p2576_p5 }
 0x4f0   : > { %2586 = shalt.err (!%p2583_p3)
}
 0x4f1   : > { %s2715_s26 = smov 128   ;;  %s2716_s5 = smov 8  }
 0x4f2   : > { %2249 = dma.vmem_to_hbm [thread:$0]  (%p3877_p13), %s3707_s23, 2048, %s3704_s20, %s1791_s12, %s2715_s26, %s2715_s26, %s2716_s5  }
 0x4f3 PF: > { %s3878_s10 = sld [smem:[#allocation15_spill]]  ;;  %s3879_s6 = sld [smem:[#allocation24_spill]] }
 0x4f4   : > { %p2255_p7 = scmp.ge.s32.totalorder %s2701_s30, 2 }
 0x4f9   : > { %s1819_s27 = sand.u32 1, %s3878_s10   ;;  %p3880_p6 = scmp.ne.s32.totalorder %s3879_s6, 0 }
 0x4fa   : > { %s1820_s11 = scalar_lea.sflag [#allocation7], %s1819_s27 }
 0x4fb   : > { %p2252_p9 = pnand %p2255_p7, %p3880_p6 }
 0x4fd   : > { %2648 = dma.done.wait (!%p2252_p9), %s1820_s11, 2048  }
 0x4fe   : > { %2650 = vsyncadd (!%p2252_p9), %s1820_s11, 4294965248  ;;  %s24_s30 = sadd.s32 1, %s2701_s30   ;;  %s3882_s2 = sld [smem:[#allocation22_spill]] }
 0x4ff   : > { %p3738_p12 = scmp.ge.s32.totalorder %s24_s30, 6   ;;  %s3883_s13 = sld [smem:[#allocation20_spill]] }
 0x500   : > { %s3884_s12 = sld [smem:[#allocation16_spill]]  ;;  %s3885_s0 = sld [smem:[#allocation21_spill]] }
 0x501   : > { %s3886_s7 = sld [smem:[#allocation18_spill]]  ;;  %s3887_s9 = sld [smem:[#allocation19_spill]] }
 0x502   : > { %s3889_s18 = smov %s2657_s19  ;;  %s3891_s20 = smov %s2665_s21 }
 0x503   : > { %s3892_s21 = smov %s2669_s22  ;;  %s3894_s23 = smov %s2677_s24 }
 0x504   : > { %s3890_s19 = smov %s3882_s2  ;;  %s3897_s26 = smov %s2693_s28 }
 0x505   : > { %s3893_s22 = smov %s3883_s13  ;;  %s3898_s27 = smov %s2697_s29 }
 0x506   : > { %s3895_s24 = smov %s3884_s12  ;;  %s3896_s25 = smov %s3885_s0 }
 0x507   : > { %s3899_s28 = smov %s3886_s7  ;;  %s3900_s29 = smov %s3887_s9 }
 0x508   :  { %23 = sbr.rel (!%p3738_p12) target bundleno = 16 (0x10), region = 152 }
 0x50f   :  { %1825 = vsyncpa [#allocation6], 1 }
 0x510   :  { %1827 = vsyncpa [#allocation6 + $0x1], 1 }
 0x511   :  { %1828 = vsyncpa [#allocation9], 1 }
 0x512   :  { %1830 = vsyncpa [#allocation9 + $0x1], 1 }
 0x513   :  { %1831 = vsyncpa [#allocation7], 1 }
 0x514   :  { %1833 = vsyncpa [#allocation7 + $0x1], 1 }

</bundles_post_ra>
